<compile_context>
chip_gen: v7x
topology: tpu7x:2x2x1
jax: 0.10.0
libtpu: 0.0.40
codegen_flags: <defaults>
</compile_context>

<pallas_src>
import jax
import jax.numpy as jnp
from jax.experimental import pallas as pl
from jax.experimental.pallas import tpu as pltpu


def _make_conv_kernel(NB, H, W, Cin, Cout, KH, KW, ph, pw):
    """Pallas kernel for one (NB, H, W, Cin) batch block."""
    M = NB * H * W            # matmul M dimension (batch folded in)
    Ktot = KH * KW * Cin      # im2col contraction dimension

    def conv_kernel(x_ref, w_ref, b_ref, o_ref, xp_ref, cols_ref):
        # x_ref   : (NB, H, W, Cin)          bf16 input block
        # w_ref   : (KH*KW*Cin, Cout)        bf16 im2col weight matrix
        # b_ref   : (1, Cout)                f32 bias
        # o_ref   : (NB, H, W, Cout)         output block (input dtype)
        # xp_ref  : (NB, H+2ph, W+2pw, Cin)  f32 VMEM scratch, zero-padded input
        # cols_ref: (M, KH*KW*Cin)           f32 VMEM scratch, im2col matrix

        # ---- in-kernel zero padding (replaces the wrapper jnp.pad HBM pass) ----
        xp_ref[...] = jnp.zeros_like(xp_ref)
        xp_ref[:, ph:ph + H, pw:pw + W, :] = x_ref[...].astype(xp_ref.dtype)

        # ---- im2col: pack the KH*KW shifted taps into one matrix ----
        for kh in range(KH):                  # static, unrolled taps
            for kw in range(KW):
                t = kh * KW + kw
                tap = xp_ref[:, kh:kh + H, kw:kw + W, :].reshape(M, Cin)
                cols_ref[:, t * Cin:(t + 1) * Cin] = tap

        # ---- single MXU matmul: (M, 9*Cin) @ (9*Cin, Cout), f32 accumulate ----
        acc = jnp.dot(cols_ref[...].astype(jnp.bfloat16), w_ref[...],
                      preferred_element_type=jnp.float32)
        acc = acc + b_ref[...].astype(jnp.float32)        # (1, Cout) broadcast
        o_ref[...] = acc.reshape(NB, H, W, Cout).astype(o_ref.dtype)

    return conv_kernel


def _pick_batch_block(N, H, W, target_rows=1024):
    """Fold batch into the matmul M dim (~target_rows rows per grid step), but
    keep >=2 grid steps when N allows so both v7x TensorCores get work."""
    nb = max(1, min(N, target_rows // max(1, H * W)))
    while nb > 1 and N // nb < 2:
        nb -= 1
    while N % nb != 0:
        nb -= 1
    return nb


def conv2d_zeros_forward(x_nchw, weight_oihw, bias, *, kernel_size=(3, 3),
                         stride=(1, 1), compute_dtype=jnp.bfloat16):
    """Forward pass of Conv2dZeros. x_nchw: (N, Cin, H, W) in PyTorch layout."""
    KH, KW = kernel_size
    assert stride == (1, 1), "Conv2dZeros default uses stride (1, 1)"
    assert KH % 2 == 1 and KW % 2 == 1, (
        "compute_same_pad formula is only exact for odd kernels at stride 1")
    ph = ((KH - 1) * stride[0] + 1) // 2       # compute_same_pad
    pw = ((KW - 1) * stride[1] + 1) // 2

    N, Cin, H, W = x_nchw.shape
    Cout = weight_oihw.shape[0]
    NB = _pick_batch_block(N, H, W)
    Hp, Wp = H + 2 * ph, W + 2 * pw
    M = NB * H * W
    Ktot = KH * KW * Cin

    # ---- layout glue (plain JAX; XLA fuses transpose + cast into one pass) ----
    x_nhwc = jnp.transpose(x_nchw, (0, 2, 3, 1)).astype(compute_dtype)
    # OIHW -> (KH*KW*Cin, Cout) im2col weight matrix (column order = kh, kw, ci).
    w_mat = jnp.transpose(weight_oihw, (2, 3, 1, 0)).reshape(Ktot, Cout)
    w_mat = w_mat.astype(compute_dtype)
    b2d = bias.reshape(1, Cout).astype(jnp.float32)

    kernel = _make_conv_kernel(NB, H, W, Cin, Cout, KH, KW, ph, pw)

    out_nhwc = pl.pallas_call(
        kernel,
        out_shape=jax.ShapeDtypeStruct((N, H, W, Cout), x_nchw.dtype),
        grid_spec=pltpu.PrefetchScalarGridSpec(
            num_scalar_prefetch=0,
            grid=(N // NB,),
            in_specs=[
                pl.BlockSpec((NB, H, W, Cin), lambda n: (n, 0, 0, 0)),
                pl.BlockSpec((Ktot, Cout), lambda n: (0, 0)),
                pl.BlockSpec((1, Cout), lambda n: (0, 0)),
            ],
            out_specs=pl.BlockSpec((NB, H, W, Cout), lambda n: (n, 0, 0, 0)),
            scratch_shapes=[
                pltpu.VMEM((NB, Hp, Wp, Cin), jnp.float32),   # padded input
                pltpu.VMEM((M, Ktot), jnp.float32),           # im2col matrix
            ]),
        compiler_params=pltpu.CompilerParams(
            dimension_semantics=("parallel",),
            # raise the scoped-VMEM cap explicitly (v5e default is 16 MiB);
            # kept below v7x's 64 MiB physical VMEM.
            vmem_limit_bytes=48 * 1024 * 1024),
    )(x_nhwc, w_mat, b2d)

    # Back to NCHW to match the PyTorch module interface.
    return jnp.transpose(out_nhwc, (0, 3, 1, 2))


if __name__ == "__main__":
    key = jax.random.PRNGKey(0)
    kx, kw_, kb = jax.random.split(key, 3)
    N, Cin, Cout, H, W = 2, 4, 8, 16, 16

    x = jax.random.normal(kx, (N, Cin, H, W), dtype=jnp.float32)

    # (1) Module as initialized: zero weight & bias -> output must be all zeros.
    w0 = jnp.zeros((Cout, Cin, 3, 3), dtype=jnp.float32)   # PyTorch OIHW
    b0 = jnp.zeros((Cout,), dtype=jnp.float32)
    out0 = jax.block_until_ready(conv2d_zeros_forward(x, w0, b0))
    assert out0.shape == (N, Cout, H, W)
    assert jnp.allclose(out0, 0.0)

    # (2) Random weights/bias: exercises tap alignment and the in-kernel
    #     padding against lax.conv (reference uses the same bf16-rounded
    #     operands with f32 accumulation, matching the kernel's math).
    wr = 0.1 * jax.random.normal(kw_, (Cout, Cin, 3, 3), dtype=jnp.float32)
    br = jax.random.normal(kb, (Cout,), dtype=jnp.float32)
    out = jax.block_until_ready(conv2d_zeros_forward(x, wr, br))

    ref = jax.lax.conv_general_dilated(
        x.astype(jnp.bfloat16), wr.astype(jnp.bfloat16),
        window_strides=(1, 1), padding=((1, 1), (1, 1)),
        dimension_numbers=("NCHW", "OIHW", "NCHW"),
        preferred_element_type=jnp.float32,
        precision=jax.lax.Precision.HIGHEST)
    ref = ref + br.reshape(1, Cout, 1, 1)

    assert out.shape == ref.shape and out.dtype == ref.dtype
    max_err = float(jnp.max(jnp.abs(out - ref)))
    assert jnp.allclose(out, ref, atol=2e-3, rtol=2e-3), max_err

    print("KERNEL_OK")
</pallas_src>

<mosaic_0001>
module attributes {stable_mosaic.version = 11 : i64} {
  func.func @conv_kernel(%arg0: i32, %arg1: memref<1x16x16x4xbf16, #tpu.memory_space<vmem>>, %arg2: memref<36x8xbf16, #tpu.memory_space<vmem>>, %arg3: memref<1x8xf32, #tpu.memory_space<vmem>>, %arg4: memref<1x16x16x8xf32, #tpu.memory_space<vmem>>, %arg5: memref<1x18x18x4xf32, #tpu.memory_space<vmem>>, %arg6: memref<256x36xf32, #tpu.memory_space<vmem>>) attributes {dimension_semantics = [#tpu.dimension_semantics<parallel>], iteration_bounds = array<i64: 2>, scalar_prefetch = 0 : i64, scratch_operands = 2 : i64, tpu.core_type = #tpu.core_type<tc>, window_params = [{transform_indices = @transform_0, window_bounds = array<i64: 1, 16, 16, 4>}, {pipeline_mode = #tpu.pipeline_mode<synchronous>, transform_indices = @transform_1, window_bounds = array<i64: 36, 8>}, {pipeline_mode = #tpu.pipeline_mode<synchronous>, transform_indices = @transform_2, window_bounds = array<i64: 1, 8>}, {transform_indices = @transform_3, window_bounds = array<i64: 1, 16, 16, 8>}]} {
    %cst = arith.constant 0.000000e+00 : f32
    %0 = vector.broadcast %cst : f32 to vector<1x18x18x4xf32>
    %c0 = arith.constant 0 : index
    %c0_0 = arith.constant 0 : index
    %c0_1 = arith.constant 0 : index
    %c0_2 = arith.constant 0 : index
    %1 = vector.load %arg5[%c0, %c0_0, %c0_1, %c0_2] : memref<1x18x18x4xf32, #tpu.memory_space<vmem>>, vector<1x18x18x4xf32>
    tpu.vector_store %arg5[%c0, %c0_0, %c0_1, %c0_2], %0 {strides = array<i32>} : memref<1x18x18x4xf32, #tpu.memory_space<vmem>>, vector<1x18x18x4xf32>,
    %c0_3 = arith.constant 0 : index
    %c0_4 = arith.constant 0 : index
    %c0_5 = arith.constant 0 : index
    %c0_6 = arith.constant 0 : index
    %2 = vector.load %arg1[%c0_3, %c0_4, %c0_5, %c0_6] : memref<1x16x16x4xbf16, #tpu.memory_space<vmem>>, vector<1x16x16x4xbf16>
    %3 = arith.extf %2 : vector<1x16x16x4xbf16> to vector<1x16x16x4xf32>
    %c0_7 = arith.constant 0 : index
    %c1 = arith.constant 1 : index
    %c1_8 = arith.constant 1 : index
    %c0_9 = arith.constant 0 : index
    %4 = vector.load %arg5[%c0_7, %c1, %c1_8, %c0_9] : memref<1x18x18x4xf32, #tpu.memory_space<vmem>>, vector<1x16x16x4xf32>
    tpu.vector_store %arg5[%c0_7, %c1, %c1_8, %c0_9], %3 {strides = array<i32>} : memref<1x18x18x4xf32, #tpu.memory_space<vmem>>, vector<1x16x16x4xf32>,
    %c0_10 = arith.constant 0 : index
    %c0_11 = arith.constant 0 : index
    %c0_12 = arith.constant 0 : index
    %c0_13 = arith.constant 0 : index
    %5 = vector.load %arg5[%c0_10, %c0_11, %c0_12, %c0_13] : memref<1x18x18x4xf32, #tpu.memory_space<vmem>>, vector<1x16x16x4xf32>
    %6 = vector.shape_cast %5 : vector<1x16x16x4xf32> to vector<256x4xf32>
    %c0_14 = arith.constant 0 : index
    %c0_15 = arith.constant 0 : index
    %7 = vector.load %arg6[%c0_14, %c0_15] : memref<256x36xf32, #tpu.memory_space<vmem>>, vector<256x4xf32>
    tpu.vector_store %arg6[%c0_14, %c0_15], %6 {strides = array<i32>} : memref<256x36xf32, #tpu.memory_space<vmem>>, vector<256x4xf32>,
    %c0_16 = arith.constant 0 : index
    %c0_17 = arith.constant 0 : index
    %c1_18 = arith.constant 1 : index
    %c0_19 = arith.constant 0 : index
    %8 = vector.load %arg5[%c0_16, %c0_17, %c1_18, %c0_19] : memref<1x18x18x4xf32, #tpu.memory_space<vmem>>, vector<1x16x16x4xf32>
    %9 = vector.shape_cast %8 : vector<1x16x16x4xf32> to vector<256x4xf32>
    %c0_20 = arith.constant 0 : index
    %c4 = arith.constant 4 : index
    %10 = vector.load %arg6[%c0_20, %c4] : memref<256x36xf32, #tpu.memory_space<vmem>>, vector<256x4xf32>
    tpu.vector_store %arg6[%c0_20, %c4], %9 {strides = array<i32>} : memref<256x36xf32, #tpu.memory_space<vmem>>, vector<256x4xf32>,
    %c0_21 = arith.constant 0 : index
    %c0_22 = arith.constant 0 : index
    %c2 = arith.constant 2 : index
    %c0_23 = arith.constant 0 : index
    %11 = vector.load %arg5[%c0_21, %c0_22, %c2, %c0_23] : memref<1x18x18x4xf32, #tpu.memory_space<vmem>>, vector<1x16x16x4xf32>
    %12 = vector.shape_cast %11 : vector<1x16x16x4xf32> to vector<256x4xf32>
    %c0_24 = arith.constant 0 : index
    %c8 = arith.constant 8 : index
    %13 = vector.load %arg6[%c0_24, %c8] : memref<256x36xf32, #tpu.memory_space<vmem>>, vector<256x4xf32>
    tpu.vector_store %arg6[%c0_24, %c8], %12 {strides = array<i32>} : memref<256x36xf32, #tpu.memory_space<vmem>>, vector<256x4xf32>,
    %c0_25 = arith.constant 0 : index
    %c1_26 = arith.constant 1 : index
    %c0_27 = arith.constant 0 : index
    %c0_28 = arith.constant 0 : index
    %14 = vector.load %arg5[%c0_25, %c1_26, %c0_27, %c0_28] : memref<1x18x18x4xf32, #tpu.memory_space<vmem>>, vector<1x16x16x4xf32>
    %15 = vector.shape_cast %14 : vector<1x16x16x4xf32> to vector<256x4xf32>
    %c0_29 = arith.constant 0 : index
    %c12 = arith.constant 12 : index
    %16 = vector.load %arg6[%c0_29, %c12] : memref<256x36xf32, #tpu.memory_space<vmem>>, vector<256x4xf32>
    tpu.vector_store %arg6[%c0_29, %c12], %15 {strides = array<i32>} : memref<256x36xf32, #tpu.memory_space<vmem>>, vector<256x4xf32>,
    %c0_30 = arith.constant 0 : index
    %c1_31 = arith.constant 1 : index
    %c1_32 = arith.constant 1 : index
    %c0_33 = arith.constant 0 : index
    %17 = vector.load %arg5[%c0_30, %c1_31, %c1_32, %c0_33] : memref<1x18x18x4xf32, #tpu.memory_space<vmem>>, vector<1x16x16x4xf32>
    %18 = vector.shape_cast %17 : vector<1x16x16x4xf32> to vector<256x4xf32>
    %c0_34 = arith.constant 0 : index
    %c16 = arith.constant 16 : index
    %19 = vector.load %arg6[%c0_34, %c16] : memref<256x36xf32, #tpu.memory_space<vmem>>, vector<256x4xf32>
    tpu.vector_store %arg6[%c0_34, %c16], %18 {strides = array<i32>} : memref<256x36xf32, #tpu.memory_space<vmem>>, vector<256x4xf32>,
    %c0_35 = arith.constant 0 : index
    %c1_36 = arith.constant 1 : index
    %c2_37 = arith.constant 2 : index
    %c0_38 = arith.constant 0 : index
    %20 = vector.load %arg5[%c0_35, %c1_36, %c2_37, %c0_38] : memref<1x18x18x4xf32, #tpu.memory_space<vmem>>, vector<1x16x16x4xf32>
    %21 = vector.shape_cast %20 : vector<1x16x16x4xf32> to vector<256x4xf32>
    %c0_39 = arith.constant 0 : index
    %c20 = arith.constant 20 : index
    %22 = vector.load %arg6[%c0_39, %c20] : memref<256x36xf32, #tpu.memory_space<vmem>>, vector<256x4xf32>
    tpu.vector_store %arg6[%c0_39, %c20], %21 {strides = array<i32>} : memref<256x36xf32, #tpu.memory_space<vmem>>, vector<256x4xf32>,
    %c0_40 = arith.constant 0 : index
    %c2_41 = arith.constant 2 : index
    %c0_42 = arith.constant 0 : index
    %c0_43 = arith.constant 0 : index
    %23 = vector.load %arg5[%c0_40, %c2_41, %c0_42, %c0_43] : memref<1x18x18x4xf32, #tpu.memory_space<vmem>>, vector<1x16x16x4xf32>
    %24 = vector.shape_cast %23 : vector<1x16x16x4xf32> to vector<256x4xf32>
    %c0_44 = arith.constant 0 : index
    %c24 = arith.constant 24 : index
    %25 = vector.load %arg6[%c0_44, %c24] : memref<256x36xf32, #tpu.memory_space<vmem>>, vector<256x4xf32>
    tpu.vector_store %arg6[%c0_44, %c24], %24 {strides = array<i32>} : memref<256x36xf32, #tpu.memory_space<vmem>>, vector<256x4xf32>,
    %c0_45 = arith.constant 0 : index
    %c2_46 = arith.constant 2 : index
    %c1_47 = arith.constant 1 : index
    %c0_48 = arith.constant 0 : index
    %26 = vector.load %arg5[%c0_45, %c2_46, %c1_47, %c0_48] : memref<1x18x18x4xf32, #tpu.memory_space<vmem>>, vector<1x16x16x4xf32>
    %27 = vector.shape_cast %26 : vector<1x16x16x4xf32> to vector<256x4xf32>
    %c0_49 = arith.constant 0 : index
    %c28 = arith.constant 28 : index
    %28 = vector.load %arg6[%c0_49, %c28] : memref<256x36xf32, #tpu.memory_space<vmem>>, vector<256x4xf32>
    tpu.vector_store %arg6[%c0_49, %c28], %27 {strides = array<i32>} : memref<256x36xf32, #tpu.memory_space<vmem>>, vector<256x4xf32>,
    %c0_50 = arith.constant 0 : index
    %c2_51 = arith.constant 2 : index
    %c2_52 = arith.constant 2 : index
    %c0_53 = arith.constant 0 : index
    %29 = vector.load %arg5[%c0_50, %c2_51, %c2_52, %c0_53] : memref<1x18x18x4xf32, #tpu.memory_space<vmem>>, vector<1x16x16x4xf32>
    %30 = vector.shape_cast %29 : vector<1x16x16x4xf32> to vector<256x4xf32>
    %c0_54 = arith.constant 0 : index
    %c32 = arith.constant 32 : index
    %31 = vector.load %arg6[%c0_54, %c32] : memref<256x36xf32, #tpu.memory_space<vmem>>, vector<256x4xf32>
    tpu.vector_store %arg6[%c0_54, %c32], %30 {strides = array<i32>} : memref<256x36xf32, #tpu.memory_space<vmem>>, vector<256x4xf32>,
    %c0_55 = arith.constant 0 : index
    %c0_56 = arith.constant 0 : index
    %32 = vector.load %arg6[%c0_55, %c0_56] : memref<256x36xf32, #tpu.memory_space<vmem>>, vector<256x36xf32>
    %33 = arith.truncf %32 : vector<256x36xf32> to vector<256x36xbf16>
    %c0_57 = arith.constant 0 : index
    %c0_58 = arith.constant 0 : index
    %34 = vector.load %arg2[%c0_57, %c0_58] : memref<36x8xbf16, #tpu.memory_space<vmem>>, vector<36x8xbf16>
    %cst_59 = arith.constant dense<0.000000e+00> : vector<256x8xf32>
    %35 = tpu.matmul %33, %34, %cst_59 {dimension_numbers = #tpu.dot_dimension_numbers<[1], [0], [0], [1], [0, 0, 1, 1], [], []>} : vector<256x36xbf16>, vector<36x8xbf16>, vector<256x8xf32> -> vector<256x8xf32>
    %c0_60 = arith.constant 0 : index
    %c0_61 = arith.constant 0 : index
    %36 = vector.load %arg3[%c0_60, %c0_61] : memref<1x8xf32, #tpu.memory_space<vmem>>, vector<1x8xf32>
    %37 = vector.broadcast %36 : vector<1x8xf32> to vector<256x8xf32>
    %38 = arith.addf %35, %37 : vector<256x8xf32>
    %39 = vector.shape_cast %38 : vector<256x8xf32> to vector<1x16x16x8xf32>
    %c0_62 = arith.constant 0 : index
    %c0_63 = arith.constant 0 : index
    %c0_64 = arith.constant 0 : index
    %c0_65 = arith.constant 0 : index
    %40 = vector.load %arg4[%c0_62, %c0_63, %c0_64, %c0_65] : memref<1x16x16x8xf32, #tpu.memory_space<vmem>>, vector<1x16x16x8xf32>
    tpu.vector_store %arg4[%c0_62, %c0_63, %c0_64, %c0_65], %39 {strides = array<i32>} : memref<1x16x16x8xf32, #tpu.memory_space<vmem>>, vector<1x16x16x8xf32>,
    return
  }
  func.func @transform_0(%arg0: i32) -> (i32, i32, i32, i32) {
    %c0_i32 = arith.constant 0 : i32
    %c0_i32_0 = arith.constant 0 : i32
    %c0_i32_1 = arith.constant 0 : i32
    %c0_i32_2 = arith.constant 0 : i32
    return %arg0, %c0_i32, %c0_i32_0, %c0_i32_1 : i32, i32, i32, i32
  }
  func.func @transform_1(%arg0: i32) -> (i32, i32) {
    %c0_i32 = arith.constant 0 : i32
    %c0_i32_0 = arith.constant 0 : i32
    %c0_i32_1 = arith.constant 0 : i32
    return %c0_i32, %c0_i32_0 : i32, i32
  }
  func.func @transform_2(%arg0: i32) -> (i32, i32) {
    %c0_i32 = arith.constant 0 : i32
    %c0_i32_0 = arith.constant 0 : i32
    %c0_i32_1 = arith.constant 0 : i32
    return %c0_i32, %c0_i32_0 : i32, i32
  }
  func.func @transform_3(%arg0: i32) -> (i32, i32, i32, i32) {
    %c0_i32 = arith.constant 0 : i32
    %c0_i32_0 = arith.constant 0 : i32
    %c0_i32_1 = arith.constant 0 : i32
    %c0_i32_2 = arith.constant 0 : i32
    return %arg0, %c0_i32, %c0_i32_0, %c0_i32_1 : i32, i32, i32, i32
  }
}

</mosaic_0001>

<bundles_post_ra>
// kernel: tpu_custom_call.1
= control target key start
LH: loop header
LB: loop body
LE: loop exit
PB: predicated region body
PF: predicated region fallthrough
CT: control target
= control target key end

     0   :  { %s2545_s12 = smov 0   ;;  %s3698_s0 = inlined_call_operand.vmem [shape: bf16[2,16,16,4], index: 0, kind: input, shape index: {}]   ;;  %s3699_s1 = inlined_call_operand.vmem [shape: bf16[36,8], index: 1, kind: input, shape index: {}]   ;;  %s3700_s2 = inlined_call_operand.vmem [shape: f32[1,8], index: 2, kind: input, shape index: {}]   ;;  %s3701_s3 = inlined_call_operand.vmem [shape: f32[2,16,16,8], index: 3, kind: output, shape index: {}]  }
   0x1 LB: > { %s2311_s13 = sadd.s32 4294967295, %s2514_s12   ;;  %p2315_p0 = scmp.ge.s32.totalorder %s2514_s12, 1  ;;  %s2514_s12 = sphi %s2545_s12, %s13_s12  }
   0x2   : > { %p137_p1 = scmp.lt.s32.totalorder %s2514_s12, 3 }
   0x4   : > { %p138_p2 = pnand %p2315_p0, %p137_p1 }
   0x6   : > { %141 = sbr.rel (%p138_p2) target bundleno = 900 (0x384), region = 32 }
   0xd   : > { %vm172_vm0 = vcmask 31744   ;;  %p2555_p3 = scmp.lt.s32.totalorder %s2311_s13, 1  ;;  %vm175_vm1 = vcmask 25600   ;;  %v2516_v0 = vmov 0.0   ;;  %s2517_s19 = smov 4   ;;  %vm549_vm2 = vcmask 64544  }
   0xe   : > { %173 = vst.msk [vmem:[#allocation2] sm:$0xff] %vm172_vm0, %v2516_v0  ;;  %174 = vst.msk [vmem:[#allocation2 + $0x8] sm:$0xff] %vm172_vm0, %v2516_v0  ;;  %s2518_s20 = smov 8   ;;  %s2519_s21 = smov 12   ;;  %vm742_vm3 = vcmask 97344   ;;  %vm935_vm4 = vcmask 130144  }
   0xf   : > { %177 = vst.msk [vmem:[#allocation2 + $0x18] sm:$0xff] %vm172_vm0, %v2516_v0  ;;  %178 = vst.msk [vmem:[#allocation2 + $0x20] sm:$0xff] %vm172_vm0, %v2516_v0  ;;  %s3716_s13 = smov (!%p2555_p3, %s2311_s13), 1  ;;  %s2520_s22 = smov 16   ;;  %vm2058_vm5 = vcmask 1041408   ;;  %vm1128_vm6 = vcmask 162944  }
  0x10   : > { %180 = vst.msk [vmem:[#allocation2 + $0x30] sm:$0xff] %vm172_vm0, %v2516_v0  ;;  %181 = vst.msk [vmem:[#allocation2 + $0x38] sm:$0xff] %vm172_vm0, %v2516_v0  ;;  %s2342_s15 = sshll.u32 %s3716_s13, 7  ;;  %s2521_s23 = smov 20   ;;  %vm1321_vm7 = vcmask 195744   ;;  %vm1515_vm8 = vcmask 228544  }
  0x11   : > { %183 = vst.msk [vmem:[#allocation2 + $0x48] sm:$0xff] %vm172_vm0, %v2516_v0  ;;  %184 = vst.msk [vmem:[#allocation2 + $0x50] sm:$0xff] %vm172_vm0, %v2516_v0  ;;  %s2623_s18 = scalar_lea.vmem %s3698_s0, %s2342_s15  ;;  %s2522_s24 = smov 24   ;;  %vm1708_vm9 = vcmask 261344   ;;  %vm1901_vm10 = vcmask 294144   ;;  %vm2009_vm11 = vcmask 293888  }
  0x12   : > { %186 = vst.msk [vmem:[#allocation2 + $0x60] sm:$0xff] %vm172_vm0, %v2516_v0  ;;  %187 = vst.msk [vmem:[#allocation2 + $0x68] sm:$0xff] %vm172_vm0, %v2516_v0  ;;  %v2345_v1 = vld [vmem:[%s2623_s18] sm:$0xff]   ;;  %v2408_v2 = vld [vmem:[%s2623_s18 + $0x8] sm:$0xff]   ;;  %s2523_s25 = smov 28   ;;  %s2524_s28 = smov 32  }
  0x13   : > { %189 = vst.msk [vmem:[#allocation2 + $0x78] sm:$0xff] %vm172_vm0, %v2516_v0  ;;  %190 = vst.msk [vmem:[#allocation2 + $0x80] sm:$0xff] %vm172_vm0, %v2516_v0  ;;  %v2409_v3 = vld [vmem:[%s2623_s18 + $0x10] sm:$0xff]   ;;  %v2346_v4 = vunpack.c.l.bf16 %v2345_v1  ;;  %v2347_v5 = vunpack.c.h.bf16 %v2345_v1  ;;  %v2350_v6 = vunpack.c.l.bf16 %v2408_v2  ;;  %v2351_v7 = vunpack.c.h.bf16 %v2408_v2  ;;  %v2410_v8 = vld [vmem:[%s2623_s18 + $0x18] sm:$0xff]   ;;  %s2343_s6 = sshll.u32 %s3716_s13, 8 }
  0x14   : > { %192 = vst.msk [vmem:[#allocation2 + $0x90] sm:$0xff] %vm172_vm0, %v2516_v0  ;;  %193 = vst.msk [vmem:[#allocation2 + $0x98] sm:$0xff] %vm172_vm0, %v2516_v0  ;;  %v2411_v9 = vld [vmem:[%s2623_s18 + $0x20] sm:$0xff]   ;;  %v2412_v10 = vld [vmem:[%s2623_s18 + $0x28] sm:$0xff]   ;;  %v2354_v13 = vunpack.c.l.bf16 %v2409_v3  ;;  %v2355_v14 = vunpack.c.h.bf16 %v2409_v3  ;;  %v2358_v15 = vunpack.c.l.bf16 %v2410_v8  ;;  %v2359_v16 = vunpack.c.h.bf16 %v2410_v8  ;;  %s3583_s11 = scalar_lea.vmem %s3701_s3, %s2343_s6 }
  0x15   : > { %195 = vst.msk [vmem:[#allocation2 + $0xa8] sm:$0xff] %vm172_vm0, %v2516_v0  ;;  %196 = vst.msk [vmem:[#allocation2 + $0xb0] sm:$0xff] %vm172_vm0, %v2516_v0  ;;  %v389_v11 = vld [vmem:[#allocation2 + $0x1] sm:$0xff]  ;;  %v2413_v17 = vld [vmem:[%s2623_s18 + $0x30] sm:$0xff]   ;;  %v2362_v18 = vunpack.c.l.bf16 %v2411_v9  ;;  %v2363_v19 = vunpack.c.h.bf16 %v2411_v9  ;;  %v2366_v20 = vunpack.c.l.bf16 %v2412_v10  ;;  %v2367_v21 = vunpack.c.h.bf16 %v2412_v10 }
  0x16   : > { %198 = vst.msk [vmem:[#allocation2 + $0xc0] sm:$0xff] %vm172_vm0, %v2516_v0  ;;  %199 = vst.msk [vmem:[#allocation2 + $0xc8] sm:$0xff] %vm172_vm0, %v2516_v0  ;;  %453 = vrot.lane.b32.xlu0 %v389_v11, %s2517_s19  ;;  %v2414_v22 = vld [vmem:[%s2623_s18 + $0x38] sm:$0xff]   ;;  %v2415_v23 = vld [vmem:[%s2623_s18 + $0x40] sm:$0xff]   ;;  %v2370_v25 = vunpack.c.l.bf16 %v2413_v17  ;;  %v2371_v26 = vunpack.c.h.bf16 %v2413_v17  ;;  %vm2223_vm12 = vcmask 64512  }
  0x17   : > { %201 = vst.msk [vmem:[#allocation2 + $0xd8] sm:$0xff] %vm172_vm0, %v2516_v0  ;;  %202 = vst.msk [vmem:[#allocation2 + $0xe0] sm:$0xff] %vm172_vm0, %v2516_v0  ;;  %v2416_v24 = vld [vmem:[%s2623_s18 + $0x48] sm:$0xff]   ;;  %v2374_v27 = vunpack.c.l.bf16 %v2414_v22  ;;  %v2375_v28 = vunpack.c.h.bf16 %v2414_v22  ;;  %v2417_v29 = vld [vmem:[%s2623_s18 + $0x50] sm:$0xff]   ;;  %v2378_v32 = vunpack.c.l.bf16 %v2415_v23  ;;  %v2379_v33 = vunpack.c.h.bf16 %v2415_v23 }
  0x18   : > { %204 = vst.msk [vmem:[#allocation2 + $0xf0] sm:$0xff] %vm172_vm0, %v2516_v0  ;;  %205 = vst.msk [vmem:[#allocation2 + $0xf8] sm:$0xff] %vm172_vm0, %v2516_v0  ;;  %v2418_v30 = vld [vmem:[%s2623_s18 + $0x58] sm:$0xff]   ;;  %v2419_v31 = vld [vmem:[%s2623_s18 + $0x60] sm:$0xff]   ;;  %v2382_v34 = vunpack.c.l.bf16 %v2416_v24  ;;  %v2383_v35 = vunpack.c.h.bf16 %v2416_v24  ;;  %v2386_v38 = vunpack.c.l.bf16 %v2417_v29  ;;  %v2387_v39 = vunpack.c.h.bf16 %v2417_v29 }
  0x19   : > { %207 = vst.msk [vmem:[#allocation2 + $0x108] sm:$0xff] %vm172_vm0, %v2516_v0  ;;  %208 = vst.msk [vmem:[#allocation2 + $0x110] sm:$0xff] %vm172_vm0, %v2516_v0  ;;  %v2420_v36 = vld [vmem:[%s2623_s18 + $0x68] sm:$0xff]   ;;  %v2421_v37 = vld [vmem:[%s2623_s18 + $0x70] sm:$0xff]   ;;  %v2390_v40 = vunpack.c.l.bf16 %v2418_v30  ;;  %v2391_v41 = vunpack.c.h.bf16 %v2418_v30  ;;  %v2394_v44 = vunpack.c.l.bf16 %v2419_v31  ;;  %v2395_v45 = vunpack.c.h.bf16 %v2419_v31 }
  0x1a   : > { %210 = vst.msk [vmem:[#allocation2 + $0x120] sm:$0xff] %vm172_vm0, %v2516_v0  ;;  %211 = vst.msk [vmem:[#allocation2 + $0x128] sm:$0xff] %vm172_vm0, %v2516_v0  ;;  %v325_v42 = vld [vmem:[#allocation2] sm:$0xff]  ;;  %v326_v43 = vld [vmem:[#allocation2 + $0x8] sm:$0xff]  ;;  %v2398_v46 = vunpack.c.l.bf16 %v2420_v36  ;;  %v2399_v47 = vunpack.c.h.bf16 %v2420_v36  ;;  %v2402_v48 = vunpack.c.l.bf16 %v2421_v37  ;;  %v2403_v49 = vunpack.c.h.bf16 %v2421_v37 }
  0x1b   : > { %213 = vst.msk [vmem:[#allocation2 + $0x138] sm:$0xff] %vm172_vm0, %v2516_v0  ;;  %214 = vst.msk [vmem:[#allocation2 + $0x140] sm:$0xff] %vm172_vm0, %v2516_v0 }
  0x1c   : > { %216 = vst.msk [vmem:[#allocation2 + $0x150] sm:$0xff] %vm172_vm0, %v2516_v0  ;;  %217 = vst.msk [vmem:[#allocation2 + $0x158] sm:$0xff] %vm172_vm0, %v2516_v0 }
  0x1d   : > { %219 = vst.msk [vmem:[#allocation2 + $0x168] sm:$0xff] %vm172_vm0, %v2516_v0  ;;  %220 = vst.msk [vmem:[#allocation2 + $0x170] sm:$0xff] %vm172_vm0, %v2516_v0 }
  0x1e   : > { %222 = vst.msk [vmem:[#allocation2 + $0x180] sm:$0xff] %vm172_vm0, %v2516_v0  ;;  %223 = vst.msk [vmem:[#allocation2 + $0x188] sm:$0xff] %vm172_vm0, %v2516_v0 }
  0x1f   : > { %225 = vst.msk [vmem:[#allocation2 + $0x198] sm:$0xff] %vm172_vm0, %v2516_v0  ;;  %226 = vst.msk [vmem:[#allocation2 + $0x1a0] sm:$0xff] %vm172_vm0, %v2516_v0 }
  0x20   : > { %176 = vst.msk [vmem:[#allocation2 + $0x10] sm:$0x3] %vm175_vm1, %v2516_v0  ;;  %179 = vst.msk [vmem:[#allocation2 + $0x28] sm:$0x3] %vm175_vm1, %v2516_v0 }
  0x21   : > { %182 = vst.msk [vmem:[#allocation2 + $0x40] sm:$0x3] %vm175_vm1, %v2516_v0  ;;  %185 = vst.msk [vmem:[#allocation2 + $0x58] sm:$0x3] %vm175_vm1, %v2516_v0 }
  0x22   : > { %188 = vst.msk [vmem:[#allocation2 + $0x70] sm:$0x3] %vm175_vm1, %v2516_v0  ;;  %191 = vst.msk [vmem:[#allocation2 + $0x88] sm:$0x3] %vm175_vm1, %v2516_v0 }
  0x23   : > { %194 = vst.msk [vmem:[#allocation2 + $0xa0] sm:$0x3] %vm175_vm1, %v2516_v0  ;;  %197 = vst.msk [vmem:[#allocation2 + $0xb8] sm:$0x3] %vm175_vm1, %v2516_v0 }
  0x24   : > { %200 = vst.msk [vmem:[#allocation2 + $0xd0] sm:$0x3] %vm175_vm1, %v2516_v0  ;;  %203 = vst.msk [vmem:[#allocation2 + $0xe8] sm:$0x3] %vm175_vm1, %v2516_v0 }
  0x25   : > { %206 = vst.msk [vmem:[#allocation2 + $0x100] sm:$0x3] %vm175_vm1, %v2516_v0  ;;  %209 = vst.msk [vmem:[#allocation2 + $0x118] sm:$0x3] %vm175_vm1, %v2516_v0 }
  0x26   : > { %212 = vst.msk [vmem:[#allocation2 + $0x130] sm:$0x3] %vm175_vm1, %v2516_v0  ;;  %215 = vst.msk [vmem:[#allocation2 + $0x148] sm:$0x3] %vm175_vm1, %v2516_v0 }
  0x27   : > { %218 = vst.msk [vmem:[#allocation2 + $0x160] sm:$0x3] %vm175_vm1, %v2516_v0  ;;  %221 = vst.msk [vmem:[#allocation2 + $0x178] sm:$0x3] %vm175_vm1, %v2516_v0  ;;  %v390_v12 = vld [vmem:[#allocation2 + $0x9] sm:$0xff] }
  0x28   : > { %224 = vst.msk [vmem:[#allocation2 + $0x190] sm:$0x3] %vm175_vm1, %v2516_v0  ;;  %227 = vst.msk [vmem:[#allocation2 + $0x1a8] sm:$0x3] %vm175_vm1, %v2516_v0  ;;  %455 = vrot.lane.b32.xlu0 %v390_v12, %s2517_s19 }
  0x29   : > { %293 = vst.msk [vmem:[#allocation2 + $0x19] sm:$0xff] %vm172_vm0, %v2346_v4  ;;  %294 = vst.msk [vmem:[#allocation2 + $0x21] sm:$0xff] %vm172_vm0, %v2347_v5 }
  0x2a   : > { %295 = vst.msk [vmem:[#allocation2 + $0x31] sm:$0xff] %vm172_vm0, %v2350_v6  ;;  %296 = vst.msk [vmem:[#allocation2 + $0x39] sm:$0xff] %vm172_vm0, %v2351_v7 }
  0x2b   : > { %297 = vst.msk [vmem:[#allocation2 + $0x49] sm:$0xff] %vm172_vm0, %v2354_v13  ;;  %298 = vst.msk [vmem:[#allocation2 + $0x51] sm:$0xff] %vm172_vm0, %v2355_v14 }
  0x2c   : > { %299 = vst.msk [vmem:[#allocation2 + $0x61] sm:$0xff] %vm172_vm0, %v2358_v15  ;;  %300 = vst.msk [vmem:[#allocation2 + $0x69] sm:$0xff] %vm172_vm0, %v2359_v16 }
  0x2d   : > { %301 = vst.msk [vmem:[#allocation2 + $0x79] sm:$0xff] %vm172_vm0, %v2362_v18  ;;  %302 = vst.msk [vmem:[#allocation2 + $0x81] sm:$0xff] %vm172_vm0, %v2363_v19 }
  0x2e   : > { %303 = vst.msk [vmem:[#allocation2 + $0x91] sm:$0xff] %vm172_vm0, %v2366_v20  ;;  %304 = vst.msk [vmem:[#allocation2 + $0x99] sm:$0xff] %vm172_vm0, %v2367_v21 }
  0x2f   : > { %305 = vst.msk [vmem:[#allocation2 + $0xa9] sm:$0xff] %vm172_vm0, %v2370_v25  ;;  %306 = vst.msk [vmem:[#allocation2 + $0xb1] sm:$0xff] %vm172_vm0, %v2371_v26 }
  0x30   : > { %307 = vst.msk [vmem:[#allocation2 + $0xc1] sm:$0xff] %vm172_vm0, %v2374_v27  ;;  %308 = vst.msk [vmem:[#allocation2 + $0xc9] sm:$0xff] %vm172_vm0, %v2375_v28  ;;  %v2672_v50 = vld [vmem:[#allocation2 + $0x19] sm:$0xff]  ;;  %v2682_v52 = vld [vmem:[#allocation2 + $0x21] sm:$0xff] }
  0x31   : > { %309 = vst.msk [vmem:[#allocation2 + $0xd9] sm:$0xff] %vm172_vm0, %v2378_v32  ;;  %310 = vst.msk [vmem:[#allocation2 + $0xe1] sm:$0xff] %vm172_vm0, %v2379_v33  ;;  %v2674_v51 = vld [vmem:[#allocation2 + $0x31] sm:$0xff]  ;;  %457 = vrot.lane.b32.xlu1 %v2672_v50, %s2517_s19  ;;  %v2690_v54 = vld [vmem:[#allocation2 + $0x39] sm:$0xff] }
  0x32   : > { %311 = vst.msk [vmem:[#allocation2 + $0xf1] sm:$0xff] %vm172_vm0, %v2382_v34  ;;  %312 = vst.msk [vmem:[#allocation2 + $0xf9] sm:$0xff] %vm172_vm0, %v2383_v35  ;;  %461 = vrot.lane.b32.xlu0 %v2674_v51, %s2517_s19  ;;  %v2684_v53 = vld [vmem:[#allocation2 + $0x49] sm:$0xff]  ;;  %v2695_v56 = vld [vmem:[#allocation2 + $0x51] sm:$0xff] }
  0x33   : > { %357 = vst.msk [vmem:[#allocation3] sm:$0xff] %vm172_vm0, %v325_v42  ;;  %358 = vst.msk [vmem:[#allocation3 + $0x8] sm:$0xff] %vm172_vm0, %v326_v43  ;;  %v397_v55 = vld [vmem:[#allocation2 + $0x61] sm:$0xff]  ;;  %v398_v58 = vld [vmem:[#allocation2 + $0x69] sm:$0xff] }
  0x34   : > { %313 = vst.msk [vmem:[#allocation2 + $0x109] sm:$0xff] %vm172_vm0, %v2386_v38  ;;  %314 = vst.msk [vmem:[#allocation2 + $0x111] sm:$0xff] %vm172_vm0, %v2387_v39  ;;  %v399_v57 = vld [vmem:[#allocation2 + $0x79] sm:$0xff]  ;;  %v400_v60 = vld [vmem:[#allocation2 + $0x81] sm:$0xff] }
  0x35   : > { %315 = vst.msk [vmem:[#allocation2 + $0x121] sm:$0xff] %vm172_vm0, %v2390_v40  ;;  %316 = vst.msk [vmem:[#allocation2 + $0x129] sm:$0xff] %vm172_vm0, %v2391_v41  ;;  %459 = vrot.lane.b32.xlu1 %v2682_v52, %s2517_s19  ;;  %v401_v59 = vld [vmem:[#allocation2 + $0x91] sm:$0xff]  ;;  %v2706_v63 = vld [vmem:[#allocation2 + $0x20] sm:$0xff] }
  0x36   : > { %317 = vst.msk [vmem:[#allocation2 + $0x139] sm:$0xff] %vm172_vm0, %v2394_v44  ;;  %318 = vst.msk [vmem:[#allocation2 + $0x141] sm:$0xff] %vm172_vm0, %v2395_v45  ;;  %465 = vrot.lane.b32.xlu0 %v2684_v53, %s2517_s19  ;;  %v403_v61 = vld [vmem:[#allocation2 + $0xa9] sm:$0xff]  ;;  %v2702_v62 = vld [vmem:[#allocation2 + $0x18] sm:$0xff] }
  0x37   : > { %319 = vst.msk [vmem:[#allocation2 + $0x151] sm:$0xff] %vm172_vm0, %v2398_v46  ;;  %320 = vst.msk [vmem:[#allocation2 + $0x159] sm:$0xff] %vm172_vm0, %v2399_v47  ;;  %v402_v0 = vld [vmem:[#allocation2 + $0x99] sm:$0xff]  ;;  %v2710_v1 = vld [vmem:[#allocation2 + $0x30] sm:$0xff] }
  0x38   : > { %321 = vst.msk [vmem:[#allocation2 + $0x169] sm:$0xff] %vm172_vm0, %v2402_v48  ;;  %322 = vst.msk [vmem:[#allocation2 + $0x171] sm:$0xff] %vm172_vm0, %v2403_v49  ;;  %v2712_v2 = vld [vmem:[#allocation2 + $0x38] sm:$0xff]  ;;  %v405_v3 = vld [vmem:[#allocation2 + $0xc1] sm:$0xff] }
  0x39   : > { %463 = vrot.lane.b32.xlu1 %v2690_v54, %s2517_s19  ;;  %359 = vst.msk [vmem:[#allocation3 + $0x10] sm:$0xff] %vm172_vm0, %v2702_v62  ;;  %360 = vst.msk [vmem:[#allocation3 + $0x18] sm:$0xff] %vm172_vm0, %v2706_v63  ;;  %v2720_v4 = vld [vmem:[#allocation2 + $0x48] sm:$0xff]  ;;  %v2722_v5 = vld [vmem:[#allocation2 + $0x50] sm:$0xff] }
  0x3a   : > { %469 = vrot.lane.b32.xlu0 %v397_v55, %s2517_s19  ;;  %361 = vst.msk [vmem:[#allocation3 + $0x20] sm:$0xff] %vm172_vm0, %v2710_v1  ;;  %362 = vst.msk [vmem:[#allocation3 + $0x28] sm:$0xff] %vm172_vm0, %v2712_v2  ;;  %v2728_v6 = vld [vmem:[#allocation2 + $0x60] sm:$0xff]  ;;  %v2730_v7 = vld [vmem:[#allocation2 + $0x68] sm:$0xff] }
  0x3b   : > { %363 = vst.msk [vmem:[#allocation3 + $0x30] sm:$0xff] %vm172_vm0, %v2720_v4  ;;  %364 = vst.msk [vmem:[#allocation3 + $0x38] sm:$0xff] %vm172_vm0, %v2722_v5  ;;  %v2732_v8 = vld [vmem:[#allocation2 + $0x78] sm:$0xff]  ;;  %v2740_v9 = vld [vmem:[#allocation2 + $0x80] sm:$0xff] }
  0x3c   : > { %365 = vst.msk [vmem:[#allocation3 + $0x40] sm:$0xff] %vm172_vm0, %v2728_v6  ;;  %366 = vst.msk [vmem:[#allocation3 + $0x48] sm:$0xff] %vm172_vm0, %v2730_v7  ;;  %v2742_v10 = vld [vmem:[#allocation2 + $0x90] sm:$0xff]  ;;  %v2744_v11 = vld [vmem:[#allocation2 + $0x98] sm:$0xff] }
  0x3d   : > { %467 = vrot.lane.b32.xlu1 %v2695_v56, %s2517_s19  ;;  %367 = vst.msk [vmem:[#allocation3 + $0x50] sm:$0xff] %vm172_vm0, %v2732_v8  ;;  %v404_v12 = vld [vmem:[#allocation2 + $0xb1] sm:$0xff]  ;;  %368 = vst.msk [vmem:[#allocation3 + $0x58] sm:$0xff] %vm172_vm0, %v2740_v9  ;;  %v2752_v13 = vld [vmem:[#allocation2 + $0xa8] sm:$0xff] }
  0x3e   : > { %473 = vrot.lane.b32.xlu0 %v399_v57, %s2517_s19  ;;  %369 = vst.msk [vmem:[#allocation3 + $0x60] sm:$0xff] %vm172_vm0, %v2742_v10  ;;  %370 = vst.msk [vmem:[#allocation3 + $0x68] sm:$0xff] %vm172_vm0, %v2744_v11  ;;  %v2754_v14 = vld [vmem:[#allocation2 + $0xb0] sm:$0xff]  ;;  %v2756_v15 = vld [vmem:[#allocation2 + $0xc0] sm:$0xff] }
  0x3f   : > { %371 = vst.msk [vmem:[#allocation3 + $0x70] sm:$0xff] %vm172_vm0, %v2752_v13  ;;  %372 = vst.msk [vmem:[#allocation3 + $0x78] sm:$0xff] %vm172_vm0, %v2754_v14  ;;  %v2766_v16 = vld [vmem:[#allocation2 + $0xc8] sm:$0xff]  ;;  %v2768_v17 = vld [vmem:[#allocation2 + $0xd8] sm:$0xff] }
  0x40   : > { %373 = vst.msk [vmem:[#allocation3 + $0x80] sm:$0xff] %vm172_vm0, %v2756_v15  ;;  %v2770_v18 = vld [vmem:[#allocation2 + $0xe0] sm:$0xff]  ;;  %374 = vst.msk [vmem:[#allocation3 + $0x88] sm:$0xff] %vm172_vm0, %v2766_v16  ;;  %v2780_v20 = vld [vmem:[#allocation2 + $0xf0] sm:$0xff] }
  0x41   : > { %471 = vrot.lane.b32.xlu1 %v398_v58, %s2517_s19  ;;  %v2772_v19 = vld [vmem:[#allocation2 + $0xd9] sm:$0xff]  ;;  %375 = vst.msk [vmem:[#allocation3 + $0x90] sm:$0xff] %vm172_vm0, %v2768_v17  ;;  %376 = vst.msk [vmem:[#allocation3 + $0x98] sm:$0xff] %vm172_vm0, %v2770_v18  ;;  %v2791_v22 = vld [vmem:[#allocation2 + $0x108] sm:$0xff] }
  0x42   : > { %477 = vrot.lane.b32.xlu0 %v401_v59, %s2517_s19  ;;  %v2782_v21 = vld [vmem:[#allocation2 + $0xf8] sm:$0xff]  ;;  %377 = vst.msk [vmem:[#allocation3 + $0xa0] sm:$0xff] %vm172_vm0, %v2780_v20  ;;  %v2793_v23 = vld [vmem:[#allocation2 + $0x110] sm:$0xff]  ;;  %379 = vst.msk [vmem:[#allocation3 + $0xb0] sm:$0xff] %vm172_vm0, %v2791_v22 }
  0x43   : > { %378 = vst.msk [vmem:[#allocation3 + $0xa8] sm:$0xff] %vm172_vm0, %v2782_v21  ;;  %v406_v24 = vld [vmem:[#allocation2 + $0xc9] sm:$0xff]  ;;  %v2795_v25 = vld [vmem:[#allocation2 + $0xf1] sm:$0xff]  ;;  %380 = vst.msk [vmem:[#allocation3 + $0xb8] sm:$0xff] %vm172_vm0, %v2793_v23 }
  0x44   : > { %v2804_v26 = vld [vmem:[#allocation2 + $0x120] sm:$0xff]  ;;  %v2806_v27 = vld [vmem:[#allocation2 + $0x128] sm:$0xff]  ;;  %v2820_v30 = vld [vmem:[#allocation2 + $0x138] sm:$0xff] }
  0x45   : > { %475 = vrot.lane.b32.xlu1 %v400_v60, %s2517_s19  ;;  %v2808_v28 = vld [vmem:[#allocation2 + $0xe1] sm:$0xff]  ;;  %v2810_v29 = vld [vmem:[#allocation2 + $0x109] sm:$0xff]  ;;  %381 = vst.msk [vmem:[#allocation3 + $0xc0] sm:$0xff] %vm172_vm0, %v2804_v26  ;;  %382 = vst.msk [vmem:[#allocation3 + $0xc8] sm:$0xff] %vm172_vm0, %v2806_v27 }
  0x46   : > { %481 = vrot.lane.b32.xlu0 %v403_v61, %s2517_s19  ;;  %v2822_v31 = vld [vmem:[#allocation2 + $0x140] sm:$0xff]  ;;  %383 = vst.msk [vmem:[#allocation3 + $0xd0] sm:$0xff] %vm172_vm0, %v2820_v30  ;;  %v2836_v34 = vld [vmem:[#allocation2 + $0x150] sm:$0xff]  ;;  %v2838_v35 = vld [vmem:[#allocation2 + $0x158] sm:$0xff] }
  0x47   : > { %v2824_v32 = vld [vmem:[#allocation2 + $0xf9] sm:$0xff]  ;;  %v2826_v33 = vld [vmem:[#allocation2 + $0x121] sm:$0xff]  ;;  %384 = vst.msk [vmem:[#allocation3 + $0xd8] sm:$0xff] %vm172_vm0, %v2822_v31  ;;  %v2840_v36 = vld [vmem:[#allocation2 + $0x111] sm:$0xff] }
  0x48   : > { %v415_v37 = vld [vmem:[#allocation2 + $0x139] sm:$0xff]  ;;  %385 = vst.msk [vmem:[#allocation3 + $0xe0] sm:$0xff] %vm172_vm0, %v2836_v34  ;;  %386 = vst.msk [vmem:[#allocation3 + $0xe8] sm:$0xff] %vm172_vm0, %v2838_v35  ;;  %v2849_v38 = vld [vmem:[#allocation2 + $0x168] sm:$0xff] }
  0x49   : > { %479 = vrot.lane.b32.xlu1 %v402_v0, %s2517_s19  ;;  %v2851_v39 = vld [vmem:[#allocation2 + $0x170] sm:$0xff]  ;;  %387 = vst.msk [vmem:[#allocation3 + $0xf0] sm:$0xff] %vm172_vm0, %v2849_v38  ;;  %v416_v42 = vld [vmem:[#allocation2 + $0x141] sm:$0xff]  ;;  %v2422_v44 = vld [vmem:[%s2623_s18 + $0x78] sm:$0xff]  }
  0x4a   : > { %485 = vrot.lane.b32.xlu0 %v405_v3, %s2517_s19  ;;  %v2853_v40 = vld [vmem:[#allocation2 + $0x129] sm:$0xff]  ;;  %v417_v41 = vld [vmem:[#allocation2 + $0x151] sm:$0xff]  ;;  %388 = vst.msk [vmem:[#allocation3 + $0xf8] sm:$0xff] %vm172_vm0, %v2851_v39  ;;  %v2406_v45 = vunpack.c.l.bf16 %v2422_v44  ;;  %v2407_v46 = vunpack.c.h.bf16 %v2422_v44  ;;  %v418_v47 = vld [vmem:[#allocation2 + $0x159] sm:$0xff] }
  0x4b   : > { %3707 = vst [vmem:[#allocation4_spill] sm:$0xff] %v2853_v40  ;;  %v419_v43 = vld [vmem:[#allocation2 + $0x169] sm:$0xff]  ;;  %v420_v49 = vld [vmem:[#allocation2 + $0x171] sm:$0xff]  ;;  %v2869_v55 = vld [vmem:[#allocation2 + $0x1a] sm:$0xff] }
  0x4c   : > { %323 = vst.msk [vmem:[#allocation2 + $0x181] sm:$0xff] %vm172_vm0, %v2406_v45  ;;  %324 = vst.msk [vmem:[#allocation2 + $0x189] sm:$0xff] %vm172_vm0, %v2407_v46  ;;  %v582_v48 = vld [vmem:[#allocation2 + $0x2] sm:$0xff]  ;;  %v583_v57 = vld [vmem:[#allocation2 + $0xa] sm:$0xff] }
  0x4d   : > { %483 = vrot.lane.b32.xlu1 %v404_v12, %s2517_s19  ;;  %v2874_v58 = vld [vmem:[#allocation2 + $0x32] sm:$0xff]  ;;  %v2879_v59 = vld [vmem:[#allocation2 + $0x22] sm:$0xff]  ;;  %v2881_v60 = vld [vmem:[#allocation2 + $0x4a] sm:$0xff] }
  0x4e   : > { %489 = vrot.lane.b32.xlu0 %v2772_v19, %s2517_s19  ;;  %v2887_v61 = vld [vmem:[#allocation2 + $0x3a] sm:$0xff]  ;;  %v2889_v0 = vld [vmem:[#allocation2 + $0x62] sm:$0xff]  ;;  %v2895_v3 = vld [vmem:[#allocation2 + $0x52] sm:$0xff] }
  0x4f   : > { %3708 = vst [vmem:[#allocation5_spill] sm:$0xff] %v2889_v0  ;;  %v592_v12 = vld [vmem:[#allocation2 + $0x7a] sm:$0xff]  ;;  %v598_v44 = vld [vmem:[#allocation2 + $0xc2] sm:$0xff]  ;;  %v597_v45 = vld [vmem:[#allocation2 + $0xb2] sm:$0xff] }
  0x50   : > { %v2909_v46 = vld [vmem:[#allocation2 + $0xda] sm:$0xff] }
  0x51   : > { %487 = vrot.lane.b32.xlu1 %v406_v24, %s2517_s19  ;;  %v2900_v24 = vld [vmem:[#allocation2 + $0x6a] sm:$0xff] }
  0x52   : > { %493 = vrot.lane.b32.xlu0 %v2795_v25, %s2517_s19  ;;  %3709 = vst [vmem:[#allocation6_spill] sm:$0xff] %v2900_v24 }
  0x55   : > { %491 = vrot.lane.b32.xlu1 %v2808_v28, %s2517_s19 }
  0x56   : > { %497 = vrot.lane.b32.xlu0 %v2810_v29, %s2517_s19 }
  0x59   : > { %495 = vrot.lane.b32.xlu1 %v2824_v32, %s2517_s19 }
  0x5a   : > { %501 = vrot.lane.b32.xlu0 %v2826_v33, %s2517_s19 }
  0x5d   : > { %499 = vrot.lane.b32.xlu1 %v2840_v36, %s2517_s19 }
  0x5e   : > { %505 = vrot.lane.b32.xlu0 %v415_v37, %s2517_s19  ;;  %v594_v37 = vld [vmem:[#allocation2 + $0x92] sm:$0xff] }
  0x61   : > { %503 = vrot.lane.b32.xlu1 %v2853_v40, %s2517_s19 }
  0x62   : > { %509 = vrot.lane.b32.xlu0 %v417_v41, %s2517_s19  ;;  %v593_v41 = vld [vmem:[#allocation2 + $0x82] sm:$0xff] }
  0x65   : > { %507 = vrot.lane.b32.xlu1 %v416_v42, %s2517_s19  ;;  %v596_v42 = vld [vmem:[#allocation2 + $0xaa] sm:$0xff] }
  0x66   : > { %513 = vrot.lane.b32.xlu0 %v419_v43, %s2517_s19  ;;  %v595_v43 = vld [vmem:[#allocation2 + $0x9a] sm:$0xff] }
  0x69   : > { %511 = vrot.lane.b32.xlu1 %v418_v47, %s2517_s19  ;;  %v599_v47 = vld [vmem:[#allocation2 + $0xca] sm:$0xff] }
  0x6a   : > { %646 = vrot.lane.b32.xlu0 %v582_v48, %s2518_s20  ;;  %v2914_v48 = vld [vmem:[#allocation2 + $0xf2] sm:$0xff] }
  0x6d   : > { %515 = vrot.lane.b32.xlu1 %v420_v49, %s2517_s19  ;;  %v2919_v49 = vld [vmem:[#allocation2 + $0xe2] sm:$0xff] }
  0x6e   : > { %650 = vrot.lane.b32.xlu0 %v2869_v55, %s2518_s20 }
  0x71   : > { %648 = vrot.lane.b32.xlu1 %v583_v57, %s2518_s20  ;;  %v2921_v57 = vld [vmem:[#allocation2 + $0x10a] sm:$0xff] }
  0x72   : > { %654 = vrot.lane.b32.xlu0 %v2874_v58, %s2518_s20 }
  0x75   : > { %652 = vrot.lane.b32.xlu1 %v2879_v59, %s2518_s20 }
  0x76   : > { %658 = vrot.lane.b32.xlu0 %v2881_v60, %s2518_s20 }
  0x79   : > { %656 = vrot.lane.b32.xlu1 %v2887_v61, %s2518_s20 }
  0x7a   : > { %662 = vrot.lane.b32.xlu0 %v2889_v0, %s2518_s20 }
  0x7d   : > { %660 = vrot.lane.b32.xlu1 %v2895_v3, %s2518_s20 }
  0x7e   : > { %666 = vrot.lane.b32.xlu0 %v592_v12, %s2518_s20  ;;  %v2927_v12 = vld [vmem:[#allocation2 + $0xfa] sm:$0xff] }
  0x81   : > { %664 = vrot.lane.b32.xlu1 %v2900_v24, %s2518_s20  ;;  %v609_v24 = vld [vmem:[#allocation2 + $0x142] sm:$0xff] }
  0x82   : > { %670 = vrot.lane.b32.xlu0 %v594_v37, %s2518_s20  ;;  %v2929_v37 = vld [vmem:[#allocation2 + $0x122] sm:$0xff] }
  0x83   : > { %3710 = vst [vmem:[#allocation7_spill] sm:$0xff] %v2929_v37 }
  0x85   : > { %668 = vrot.lane.b32.xlu1 %v593_v41, %s2518_s20  ;;  %v2935_v41 = vld [vmem:[#allocation2 + $0x112] sm:$0xff] }
  0x86   : > { %674 = vrot.lane.b32.xlu0 %v596_v42, %s2518_s20  ;;  %v608_v42 = vld [vmem:[#allocation2 + $0x13a] sm:$0xff] }
  0x89   : > { %672 = vrot.lane.b32.xlu1 %v595_v43, %s2518_s20  ;;  %v454_v43 = vpop.permute.xlu0 %453 }
  0x8a   : > { %678 = vrot.lane.b32.xlu0 %v598_v44, %s2518_s20  ;;  %550 = vst.msk [vmem:[#allocation3] sm:$0xff] %vm549_vm2, %v454_v43  ;;  %v2941_v44 = vld [vmem:[#allocation2 + $0x12a] sm:$0xff] }
  0x8d   : > { %676 = vrot.lane.b32.xlu1 %v597_v45, %s2518_s20  ;;  %v610_v45 = vld [vmem:[#allocation2 + $0x152] sm:$0xff] }
  0x8e   : > { %682 = vrot.lane.b32.xlu0 %v2909_v46, %s2518_s20 }
  0x91   : > { %680 = vrot.lane.b32.xlu1 %v599_v47, %s2518_s20 }
  0x92   : > { %686 = vrot.lane.b32.xlu0 %v2914_v48, %s2518_s20 }
  0x95   : > { %684 = vrot.lane.b32.xlu1 %v2919_v49, %s2518_s20 }
  0x96   : > { %690 = vrot.lane.b32.xlu0 %v2921_v57, %s2518_s20 }
  0x99   : > { %688 = vrot.lane.b32.xlu1 %v2927_v12, %s2518_s20 }
  0x9a   : > { %694 = vrot.lane.b32.xlu0 %v2929_v37, %s2518_s20  ;;  %v456_v47 = vpop.permute.xlu0 %455  ;;  %v612_v37 = vld [vmem:[#allocation2 + $0x16a] sm:$0xff] }
  0x9b   : > { %551 = vst.msk [vmem:[#allocation3 + $0x8] sm:$0xff] %vm549_vm2, %v456_v47 }
  0x9d   : > { %692 = vrot.lane.b32.xlu1 %v2935_v41, %s2518_s20 }
  0x9e   : > { %698 = vrot.lane.b32.xlu0 %v608_v42, %s2518_s20  ;;  %v611_v42 = vld [vmem:[#allocation2 + $0x15a] sm:$0xff] }
  0xa1   : > { %696 = vrot.lane.b32.xlu1 %v2941_v44, %s2518_s20 }
  0xa2   : > { %702 = vrot.lane.b32.xlu0 %v610_v45, %s2518_s20 }
  0xa3   : > { %v458_v0 = vpop.permute.xlu1 %457 }
  0xa4   : > { %v462_v43 = vpop.permute.xlu0 %461  ;;  %552 = vst.msk [vmem:[#allocation3 + $0x10] sm:$0xff] %vm549_vm2, %v458_v0  ;;  %v613_v0 = vld [vmem:[#allocation2 + $0x172] sm:$0xff] }
  0xa5   : > { %554 = vst.msk [vmem:[#allocation3 + $0x20] sm:$0xff] %vm549_vm2, %v462_v43  ;;  %700 = vrot.lane.b32.xlu1 %v609_v24, %s2518_s20 }
  0xa6   : > { %706 = vrot.lane.b32.xlu0 %v612_v37, %s2518_s20 }
  0xa7   : > { %v460_v40 = vpop.permute.xlu1 %459 }
  0xa8   : > { %v466_v47 = vpop.permute.xlu0 %465  ;;  %553 = vst.msk [vmem:[#allocation3 + $0x18] sm:$0xff] %vm549_vm2, %v460_v40 }
  0xa9   : > { %556 = vst.msk [vmem:[#allocation3 + $0x30] sm:$0xff] %vm549_vm2, %v466_v47  ;;  %704 = vrot.lane.b32.xlu1 %v611_v42, %s2518_s20 }
  0xaa   : > { %839 = vrot.lane.b32.xlu0 %v2702_v62, %s2519_s21 }
  0xab   : > { %v464_v45 = vpop.permute.xlu1 %463 }
  0xac   : > { %v470_v43 = vpop.permute.xlu0 %469  ;;  %555 = vst.msk [vmem:[#allocation3 + $0x28] sm:$0xff] %vm549_vm2, %v464_v45 }
  0xad   : > { %558 = vst.msk [vmem:[#allocation3 + $0x40] sm:$0xff] %vm549_vm2, %v470_v43  ;;  %708 = vrot.lane.b32.xlu1 %v613_v0, %s2518_s20 }
  0xae   : > { %843 = vrot.lane.b32.xlu0 %v2710_v1, %s2519_s21 }
  0xaf   : > { %v468_v40 = vpop.permute.xlu1 %467 }
  0xb0   : > { %v474_v24 = vpop.permute.xlu0 %473  ;;  %557 = vst.msk [vmem:[#allocation3 + $0x38] sm:$0xff] %vm549_vm2, %v468_v40 }
  0xb1   : > { %560 = vst.msk [vmem:[#allocation3 + $0x50] sm:$0xff] %vm549_vm2, %v474_v24  ;;  %841 = vrot.lane.b32.xlu1 %v2706_v63, %s2519_s21 }
  0xb2   : > { %847 = vrot.lane.b32.xlu0 %v2720_v4, %s2519_s21 }
  0xb3   : > { %v472_v62 = vpop.permute.xlu1 %471 }
  0xb4   : > { %v478_v37 = vpop.permute.xlu0 %477  ;;  %559 = vst.msk [vmem:[#allocation3 + $0x48] sm:$0xff] %vm549_vm2, %v472_v62 }
  0xb5   : > { %562 = vst.msk [vmem:[#allocation3 + $0x60] sm:$0xff] %vm549_vm2, %v478_v37  ;;  %845 = vrot.lane.b32.xlu1 %v2712_v2, %s2519_s21 }
  0xb6   : > { %851 = vrot.lane.b32.xlu0 %v2728_v6, %s2519_s21 }
  0xb7   : > { %v476_v42 = vpop.permute.xlu1 %475 }
  0xb8   : > { %v482_v47 = vpop.permute.xlu0 %481  ;;  %561 = vst.msk [vmem:[#allocation3 + $0x58] sm:$0xff] %vm549_vm2, %v476_v42 }
  0xb9   : > { %564 = vst.msk [vmem:[#allocation3 + $0x70] sm:$0xff] %vm549_vm2, %v482_v47  ;;  %849 = vrot.lane.b32.xlu1 %v2722_v5, %s2519_s21 }
  0xba   : > { %855 = vrot.lane.b32.xlu0 %v2732_v8, %s2519_s21 }
  0xbb   : > { %v480_v63 = vpop.permute.xlu1 %479 }
  0xbc   : > { %v486_v0 = vpop.permute.xlu0 %485  ;;  %563 = vst.msk [vmem:[#allocation3 + $0x68] sm:$0xff] %vm549_vm2, %v480_v63 }
  0xbd   : > { %566 = vst.msk [vmem:[#allocation3 + $0x80] sm:$0xff] %vm549_vm2, %v486_v0  ;;  %853 = vrot.lane.b32.xlu1 %v2730_v7, %s2519_s21 }
  0xbe   : > { %859 = vrot.lane.b32.xlu0 %v2742_v10, %s2519_s21 }
  0xbf   : > { %v484_v45 = vpop.permute.xlu1 %483 }
  0xc0   : > { %v490_v43 = vpop.permute.xlu0 %489  ;;  %565 = vst.msk [vmem:[#allocation3 + $0x78] sm:$0xff] %vm549_vm2, %v484_v45  ;;  %v805_v45 = vld [vmem:[#allocation2 + $0x180] sm:$0xff] }
  0xc1   : > { %568 = vst.msk [vmem:[#allocation3 + $0x90] sm:$0xff] %vm549_vm2, %v490_v43  ;;  %857 = vrot.lane.b32.xlu1 %v2740_v9, %s2519_s21 }
  0xc2   : > { %863 = vrot.lane.b32.xlu0 %v2752_v13, %s2519_s21 }
  0xc3   : > { %v488_v40 = vpop.permute.xlu1 %487 }
  0xc4   : > { %v494_v24 = vpop.permute.xlu0 %493  ;;  %567 = vst.msk [vmem:[#allocation3 + $0x88] sm:$0xff] %vm549_vm2, %v488_v40 }
  0xc5   : > { %570 = vst.msk [vmem:[#allocation3 + $0xa0] sm:$0xff] %vm549_vm2, %v494_v24  ;;  %861 = vrot.lane.b32.xlu1 %v2744_v11, %s2519_s21 }
  0xc6   : > { %867 = vrot.lane.b32.xlu0 %v2756_v15, %s2519_s21 }
  0xc7   : > { %v492_v10 = vpop.permute.xlu1 %491 }
  0xc8   : > { %v498_v62 = vpop.permute.xlu0 %497  ;;  %569 = vst.msk [vmem:[#allocation3 + $0x98] sm:$0xff] %vm549_vm2, %v492_v10 }
  0xc9   : > { %572 = vst.msk [vmem:[#allocation3 + $0xb0] sm:$0xff] %vm549_vm2, %v498_v62  ;;  %865 = vrot.lane.b32.xlu1 %v2754_v14, %s2519_s21  ;;  %v806_v62 = vld [vmem:[#allocation2 + $0x188] sm:$0xff] }
  0xca   : > { %871 = vrot.lane.b32.xlu0 %v2768_v17, %s2519_s21 }
  0xcb   : > { %v496_v13 = vpop.permute.xlu1 %495 }
  0xcc   : > { %v502_v37 = vpop.permute.xlu0 %501  ;;  %571 = vst.msk [vmem:[#allocation3 + $0xa8] sm:$0xff] %vm549_vm2, %v496_v13 }
  0xcd   : > { %574 = vst.msk [vmem:[#allocation3 + $0xc0] sm:$0xff] %vm549_vm2, %v502_v37  ;;  %869 = vrot.lane.b32.xlu1 %v2766_v16, %s2519_s21 }
  0xce   : > { %875 = vrot.lane.b32.xlu0 %v2780_v20, %s2519_s21 }
  0xcf   : > { %v500_v11 = vpop.permute.xlu1 %499 }
  0xd0   : > { %v506_v15 = vpop.permute.xlu0 %505  ;;  %573 = vst.msk [vmem:[#allocation3 + $0xb8] sm:$0xff] %vm549_vm2, %v500_v11 }
  0xd1   : > { %576 = vst.msk [vmem:[#allocation3 + $0xd0] sm:$0xff] %vm549_vm2, %v506_v15  ;;  %873 = vrot.lane.b32.xlu1 %v2770_v18, %s2519_s21 }
  0xd2   : > { %879 = vrot.lane.b32.xlu0 %v2791_v22, %s2519_s21 }
  0xd3   : > { %v504_v14 = vpop.permute.xlu1 %503 }
  0xd4   : > { %v510_v17 = vpop.permute.xlu0 %509  ;;  %575 = vst.msk [vmem:[#allocation3 + $0xc8] sm:$0xff] %vm549_vm2, %v504_v14 }
  0xd5   : > { %578 = vst.msk [vmem:[#allocation3 + $0xe0] sm:$0xff] %vm549_vm2, %v510_v17  ;;  %877 = vrot.lane.b32.xlu1 %v2782_v21, %s2519_s21 }
  0xd6   : > { %883 = vrot.lane.b32.xlu0 %v2804_v26, %s2519_s21 }
  0xd7   : > { %v508_v16 = vpop.permute.xlu1 %507 }
  0xd8   : > { %v514_v42 = vpop.permute.xlu0 %513  ;;  %577 = vst.msk [vmem:[#allocation3 + $0xd8] sm:$0xff] %vm549_vm2, %v508_v16 }
  0xd9   : > { %580 = vst.msk [vmem:[#allocation3 + $0xf0] sm:$0xff] %vm549_vm2, %v514_v42  ;;  %881 = vrot.lane.b32.xlu1 %v2793_v23, %s2519_s21 }
  0xda   : > { %887 = vrot.lane.b32.xlu0 %v2820_v30, %s2519_s21 }
  0xdb   : > { %v512_v18 = vpop.permute.xlu1 %511 }
  0xdc   : > { %v647_v47 = vpop.permute.xlu0 %646  ;;  %579 = vst.msk [vmem:[#allocation3 + $0xe8] sm:$0xff] %vm549_vm2, %v512_v18 }
  0xdd   : > { %743 = vst.msk [vmem:[#allocation3] sm:$0xff] %vm742_vm3, %v647_v47  ;;  %885 = vrot.lane.b32.xlu1 %v2806_v27, %s2519_s21 }
  0xde   : > { %891 = vrot.lane.b32.xlu0 %v2836_v34, %s2519_s21 }
  0xdf   : > { %v516_v63 = vpop.permute.xlu1 %515 }
  0xe0   : > { %v651_v0 = vpop.permute.xlu0 %650  ;;  %581 = vst.msk [vmem:[#allocation3 + $0xf8] sm:$0xff] %vm549_vm2, %v516_v63 }
  0xe1   : > { %745 = vst.msk [vmem:[#allocation3 + $0x10] sm:$0xff] %vm742_vm3, %v651_v0  ;;  %889 = vrot.lane.b32.xlu1 %v2822_v31, %s2519_s21 }
  0xe2   : > { %895 = vrot.lane.b32.xlu0 %v2849_v38, %s2519_s21 }
  0xe3   : > { %v649_v43 = vpop.permute.xlu1 %648 }
  0xe4   : > { %v655_v40 = vpop.permute.xlu0 %654  ;;  %744 = vst.msk [vmem:[#allocation3 + $0x8] sm:$0xff] %vm742_vm3, %v649_v43 }
  0xe5   : > { %747 = vst.msk [vmem:[#allocation3 + $0x20] sm:$0xff] %vm742_vm3, %v655_v40  ;;  %893 = vrot.lane.b32.xlu1 %v2838_v35, %s2519_s21  ;;  %v2506_v40 = vld [vmem:[%s3699_s1 + $0x8] sm:$0xff]  }
  0xe6   : > { %899 = vrot.lane.b32.xlu0 %v805_v45, %s2519_s21 }
  0xe7   : > { %v653_v24 = vpop.permute.xlu1 %652 }
  0xe8   : > { %v659_v10 = vpop.permute.xlu0 %658  ;;  %746 = vst.msk [vmem:[#allocation3 + $0x18] sm:$0xff] %vm742_vm3, %v653_v24  ;;  %v2507_v24 = vld [vmem:[%s3699_s1 + $0x10] ss:$0 sps:$4 sm:$0x33]  }
  0xe9   : > { %749 = vst.msk [vmem:[#allocation3 + $0x30] sm:$0xff] %vm742_vm3, %v659_v10  ;;  %897 = vrot.lane.b32.xlu1 %v2851_v39, %s2519_s21 }
  0xea   : > { %1032 = vrot.lane.b32.xlu0 %v2672_v50, %s2520_s22 }
  0xeb   : > { %v657_v13 = vpop.permute.xlu1 %656 }
  0xec   : > { %v663_v37 = vpop.permute.xlu0 %662  ;;  %748 = vst.msk [vmem:[#allocation3 + $0x28] sm:$0xff] %vm742_vm3, %v657_v13 }
  0xed   : > { %751 = vst.msk [vmem:[#allocation3 + $0x40] sm:$0xff] %vm742_vm3, %v663_v37  ;;  %901 = vrot.lane.b32.xlu1 %v806_v62, %s2519_s21 }
  0xee   : > { %1036 = vrot.lane.b32.xlu0 %v2674_v51, %s2520_s22 }
  0xef   : > { %v661_v11 = vpop.permute.xlu1 %660 }
  0xf0   : > { %v667_v15 = vpop.permute.xlu0 %666  ;;  %750 = vst.msk [vmem:[#allocation3 + $0x38] sm:$0xff] %vm742_vm3, %v661_v11 }
  0xf1   : > { %753 = vst.msk [vmem:[#allocation3 + $0x50] sm:$0xff] %vm742_vm3, %v667_v15  ;;  %1034 = vrot.lane.b32.xlu1 %v2682_v52, %s2520_s22 }
  0xf2   : > { %1066 = vrot.lane.b32.xlu0 %v2808_v28, %s2520_s22 }
  0xf3   : > { %v665_v50 = vpop.permute.xlu1 %664 }
  0xf4   : > { %v671_v14 = vpop.permute.xlu0 %670  ;;  %752 = vst.msk [vmem:[#allocation3 + $0x48] sm:$0xff] %vm742_vm3, %v665_v50  ;;  %v3183_v50 = vld [vmem:[#allocation2 + $0x61] sm:$0xff] }
  0xf5   : > { %755 = vst.msk [vmem:[#allocation3 + $0x60] sm:$0xff] %vm742_vm3, %v671_v14  ;;  %1064 = vrot.lane.b32.xlu1 %v2772_v19, %s2520_s22 }
  0xf6   : > { %1068 = vrot.lane.b32.xlu0 %v2795_v25, %s2520_s22 }
  0xf7   : > { %v669_v17 = vpop.permute.xlu1 %668 }
  0xf8   : > { %v675_v16 = vpop.permute.xlu0 %674  ;;  %754 = vst.msk [vmem:[#allocation3 + $0x58] sm:$0xff] %vm742_vm3, %v669_v17 }
  0xf9   : > { %757 = vst.msk [vmem:[#allocation3 + $0x70] sm:$0xff] %vm742_vm3, %v675_v16  ;;  %1038 = vrot.lane.b32.xlu1 %v2690_v54, %s2520_s22 }
  0xfa   : > { %1225 = vrot.lane.b32.xlu0 %v2869_v55, %s2521_s23 }
  0xfb   : > { %v673_v52 = vpop.permute.xlu1 %672 }
  0xfc   : > { %v679_v28 = vpop.permute.xlu0 %678  ;;  %756 = vst.msk [vmem:[#allocation3 + $0x68] sm:$0xff] %vm742_vm3, %v673_v52 }
  0xfd   : > { %759 = vst.msk [vmem:[#allocation3 + $0x80] sm:$0xff] %vm742_vm3, %v679_v28  ;;  %1070 = vrot.lane.b32.xlu1 %v2824_v32, %s2520_s22 }
  0xfe   : > { %1257 = vrot.lane.b32.xlu0 %v2909_v46, %s2521_s23 }
  0xff   : > { %v677_v19 = vpop.permute.xlu1 %676 }
 0x100   : > { %v683_v42 = vpop.permute.xlu0 %682  ;;  %758 = vst.msk [vmem:[#allocation3 + $0x78] sm:$0xff] %vm742_vm3, %v677_v19 }
 0x101   : > { %761 = vst.msk [vmem:[#allocation3 + $0x90] sm:$0xff] %vm742_vm3, %v683_v42  ;;  %1227 = vrot.lane.b32.xlu1 %v2879_v59, %s2521_s23 }
 0x102   : > { %1229 = vrot.lane.b32.xlu0 %v2874_v58, %s2521_s23 }
 0x103   : > { %v681_v55 = vpop.permute.xlu1 %680 }
 0x104   : > { %v687_v18 = vpop.permute.xlu0 %686  ;;  %760 = vst.msk [vmem:[#allocation3 + $0x88] sm:$0xff] %vm742_vm3, %v681_v55 }
 0x105   : > { %763 = vst.msk [vmem:[#allocation3 + $0xa0] sm:$0xff] %vm742_vm3, %v687_v18  ;;  %1259 = vrot.lane.b32.xlu1 %v2919_v49, %s2521_s23 }
 0x106   : > { %1261 = vrot.lane.b32.xlu0 %v2914_v48, %s2521_s23 }
 0x107   : > { %v685_v46 = vpop.permute.xlu1 %684 }
 0x108   : > { %v691_v47 = vpop.permute.xlu0 %690  ;;  %762 = vst.msk [vmem:[#allocation3 + $0x98] sm:$0xff] %vm742_vm3, %v685_v46 }
 0x109   : > { %765 = vst.msk [vmem:[#allocation3 + $0xb0] sm:$0xff] %vm742_vm3, %v691_v47  ;;  %1231 = vrot.lane.b32.xlu1 %v2887_v61, %s2521_s23 }
 0x10a   : > { %1419 = vrot.lane.b32.xlu0 %v2710_v1, %s2522_s24 }
 0x10b   : > { %v689_v59 = vpop.permute.xlu1 %688 }
 0x10c   : > { %v695_v63 = vpop.permute.xlu0 %694  ;;  %764 = vst.msk [vmem:[#allocation3 + $0xa8] sm:$0xff] %vm742_vm3, %v689_v59 }
 0x10d   : > { %767 = vst.msk [vmem:[#allocation3 + $0xc0] sm:$0xff] %vm742_vm3, %v695_v63  ;;  %1263 = vrot.lane.b32.xlu1 %v2927_v12, %s2521_s23 }
 0x10e   : > { %1451 = vrot.lane.b32.xlu0 %v2780_v20, %s2522_s24 }
 0x10f   : > { %v693_v49 = vpop.permute.xlu1 %692 }
 0x110   : > { %v699_v0 = vpop.permute.xlu0 %698  ;;  %766 = vst.msk [vmem:[#allocation3 + $0xb8] sm:$0xff] %vm742_vm3, %v693_v49 }
 0x111   : > { %769 = vst.msk [vmem:[#allocation3 + $0xd0] sm:$0xff] %vm742_vm3, %v699_v0  ;;  %1421 = vrot.lane.b32.xlu1 %v2712_v2, %s2522_s24 }
 0x112   : > { %1423 = vrot.lane.b32.xlu0 %v2720_v4, %s2522_s24 }
 0x113   : > { %v697_v1 = vpop.permute.xlu1 %696 }
 0x114   : > { %v703_v45 = vpop.permute.xlu0 %702  ;;  %768 = vst.msk [vmem:[#allocation3 + $0xc8] sm:$0xff] %vm742_vm3, %v697_v1 }
 0x115   : > { %771 = vst.msk [vmem:[#allocation3 + $0xe0] sm:$0xff] %vm742_vm3, %v703_v45  ;;  %1453 = vrot.lane.b32.xlu1 %v2782_v21, %s2522_s24 }
 0x116   : > { %1455 = vrot.lane.b32.xlu0 %v2791_v22, %s2522_s24 }
 0x117   : > { %v701_v20 = vpop.permute.xlu1 %700 }
 0x118   : > { %v707_v43 = vpop.permute.xlu0 %706  ;;  %770 = vst.msk [vmem:[#allocation3 + $0xd8] sm:$0xff] %vm742_vm3, %v701_v20 }
 0x119   : > { %773 = vst.msk [vmem:[#allocation3 + $0xf0] sm:$0xff] %vm742_vm3, %v707_v43  ;;  %1425 = vrot.lane.b32.xlu1 %v2722_v5, %s2522_s24 }
 0x11a   : > { %1612 = vrot.lane.b32.xlu0 %v2674_v51, %s2523_s25 }
 0x11b   : > { %v705_v2 = vpop.permute.xlu1 %704 }
 0x11c   : > { %v840_v4 = vpop.permute.xlu0 %839  ;;  %772 = vst.msk [vmem:[#allocation3 + $0xe8] sm:$0xff] %vm742_vm3, %v705_v2  ;;  %v1570_v2 = vld [vmem:[#allocation2 + $0x139] sm:$0xff] }
 0x11d   : > { %936 = vst.msk [vmem:[#allocation3] sm:$0xff] %vm935_vm4, %v840_v4  ;;  %1457 = vrot.lane.b32.xlu1 %v2793_v23, %s2522_s24 }
 0x11e   : > { %1644 = vrot.lane.b32.xlu0 %v2795_v25, %s2523_s25 }
 0x11f   : > { %v709_v21 = vpop.permute.xlu1 %708 }
 0x120   : > { %v844_v22 = vpop.permute.xlu0 %843  ;;  %774 = vst.msk [vmem:[#allocation3 + $0xf8] sm:$0xff] %vm742_vm3, %v709_v21 }
 0x121   : > { %938 = vst.msk [vmem:[#allocation3 + $0x10] sm:$0xff] %vm935_vm4, %v844_v22  ;;  %1614 = vrot.lane.b32.xlu1 %v2690_v54, %s2523_s25  ;;  %v1745_v22 = vld [vmem:[#allocation2 + $0x62] sm:$0xff] }
 0x122   : > { %1616 = vrot.lane.b32.xlu0 %v2684_v53, %s2523_s25  ;;  %v2505_v53 = vld [vmem:[%s3699_s1] sm:$0xff]  }
 0x123   : > { %v842_v51 = vpop.permute.xlu1 %841  ;;  %2442 = vmatprep.subr.bf16.mxu0 %v2505_v53  ;;  %2480 = vmatprep.subr.bf16.mxu1 %v2505_v53 }
 0x124   : > { %v848_v5 = vpop.permute.xlu0 %847  ;;  %937 = vst.msk [vmem:[#allocation3 + $0x8] sm:$0xff] %vm935_vm4, %v842_v51  ;;  %2443 = vmatpush3.bf16.msra.mxu0 %v2505_v53  ;;  %2483 = vmatpush3.bf16.msra.mxu1 %v2505_v53 }
 0x125   : > { %940 = vst.msk [vmem:[#allocation3 + $0x20] sm:$0xff] %vm935_vm4, %v848_v5  ;;  %1646 = vrot.lane.b32.xlu1 %v2824_v32, %s2523_s25  ;;  %2444 = vmatprep.subr.bf16.mxu0 %v2506_v40 }
 0x126   : > { %1648 = vrot.lane.b32.xlu0 %v2810_v29, %s2523_s25  ;;  %2481 = vmatprep.subr.bf16.mxu1 %v2506_v40 }
 0x127   : > { %v846_v23 = vpop.permute.xlu1 %845 }
 0x128   : > { %v852_v25 = vpop.permute.xlu0 %851  ;;  %939 = vst.msk [vmem:[#allocation3 + $0x18] sm:$0xff] %vm935_vm4, %v846_v23  ;;  %2445 = vmatpush3.bf16.msra.mxu0 %v2506_v40  ;;  %2484 = vmatpush3.bf16.msra.mxu1 %v2506_v40  ;;  %v1571_v23 = vld [vmem:[#allocation2 + $0x141] sm:$0xff] }
 0x129   : > { %942 = vst.msk [vmem:[#allocation3 + $0x30] sm:$0xff] %vm935_vm4, %v852_v25  ;;  %1618 = vrot.lane.b32.xlu1 %v2695_v56, %s2523_s25  ;;  %2486 = vmatprep.subr.msk.bf16.mxu0 %vm2058_vm5, %v2507_v24  ;;  %v1761_v25 = vld [vmem:[#allocation2 + $0x122] sm:$0xff]  ;;  %v1747_v40 = vld [vmem:[#allocation2 + $0x7a] sm:$0xff] }
 0x12a   : > { %1805 = vrot.lane.b32.xlu0 %v2874_v58, %s2524_s28  ;;  %2487 = vmatprep.subr.msk.bf16.mxu1 %vm2058_vm5, %v2507_v24 }
 0x12b   : > { %v850_v54 = vpop.permute.xlu1 %849 }
 0x12c   : > { %v856_v32 = vpop.permute.xlu0 %855  ;;  %941 = vst.msk [vmem:[#allocation3 + $0x28] sm:$0xff] %vm935_vm4, %v850_v54 }
 0x12d   : > { %944 = vst.msk [vmem:[#allocation3 + $0x40] sm:$0xff] %vm935_vm4, %v856_v32  ;;  %1650 = vrot.lane.b32.xlu1 %v2840_v36, %s2523_s25  ;;  %v1746_v32 = vld [vmem:[#allocation2 + $0x6a] sm:$0xff] }
 0x12e   : > { %1837 = vrot.lane.b32.xlu0 %v2914_v48, %s2524_s28  ;;  %v2060_v48 = vsel %vm2058_vm5, %v2507_v24, 0  ;;  %v1762_v24 = vld [vmem:[#allocation2 + $0x12a] sm:$0xff] }
 0x12f   : > { %v854_v56 = vpop.permute.xlu1 %853  ;;  %2447 = vmatpush3.bf16.msra.mxu0 %v2060_v48  ;;  %2485 = vmatpush3.bf16.msra.mxu1 %v2060_v48  ;;  %v1763_v48 = vld [vmem:[#allocation2 + $0x13a] sm:$0xff] }
 0x130   : > { %v860_v58 = vpop.permute.xlu0 %859  ;;  %943 = vst.msk [vmem:[#allocation3 + $0x38] sm:$0xff] %vm935_vm4, %v854_v56 }
 0x131   : > { %946 = vst.msk [vmem:[#allocation3 + $0x50] sm:$0xff] %vm935_vm4, %v860_v58  ;;  %1807 = vrot.lane.b32.xlu1 %v2887_v61, %s2524_s28  ;;  %v972_v61 = vld [vmem:[#allocation2 + $0x49] sm:$0xff] }
 0x132   : > { %1809 = vrot.lane.b32.xlu0 %v2881_v60, %s2524_s28 }
 0x133   : > { %v858_v10 = vpop.permute.xlu1 %857 }
 0x134   : > { %v864_v62 = vpop.permute.xlu0 %863  ;;  %945 = vst.msk [vmem:[#allocation3 + $0x48] sm:$0xff] %vm935_vm4, %v858_v10 }
 0x135   : > { %948 = vst.msk [vmem:[#allocation3 + $0x60] sm:$0xff] %vm935_vm4, %v864_v62  ;;  %1839 = vrot.lane.b32.xlu1 %v2927_v12, %s2524_s28  ;;  %v973_v12 = vld [vmem:[#allocation2 + $0x51] sm:$0xff] }
 0x136   : > { %1841 = vrot.lane.b32.xlu0 %v2921_v57, %s2524_s28 }
 0x137   : > { %v862_v13 = vpop.permute.xlu1 %861 }
 0x138   : > { %v868_v37 = vpop.permute.xlu0 %867  ;;  %947 = vst.msk [vmem:[#allocation3 + $0x58] sm:$0xff] %vm935_vm4, %v862_v13 }
 0x139   : > { %950 = vst.msk [vmem:[#allocation3 + $0x70] sm:$0xff] %vm935_vm4, %v868_v37  ;;  %1811 = vrot.lane.b32.xlu1 %v2895_v3, %s2524_s28 }
 0x13a   : > { %1040 = vrot.lane.b32.xlu0 %v972_v61, %s2520_s22  ;;  %v1748_v61 = vld [vmem:[#allocation2 + $0x82] sm:$0xff] }
 0x13b   : > { %v866_v11 = vpop.permute.xlu1 %865 }
 0x13c   : > { %v872_v15 = vpop.permute.xlu0 %871  ;;  %949 = vst.msk [vmem:[#allocation3 + $0x68] sm:$0xff] %vm935_vm4, %v866_v11  ;;  %v1764_v11 = vld [vmem:[#allocation2 + $0x142] sm:$0xff] }
 0x13d   : > { %952 = vst.msk [vmem:[#allocation3 + $0x80] sm:$0xff] %vm935_vm4, %v872_v15  ;;  %1843 = vrot.lane.b32.xlu1 %v2935_v41, %s2524_s28 }
 0x13e   : > { %1072 = vrot.lane.b32.xlu0 %v2810_v29, %s2520_s22  ;;  %v3196_v29 = vld [vmem:[#allocation2 + $0x69] sm:$0xff] }
 0x13f   : > { %v870_v14 = vpop.permute.xlu1 %869 }
 0x140   : > { %v876_v17 = vpop.permute.xlu0 %875  ;;  %951 = vst.msk [vmem:[#allocation3 + $0x78] sm:$0xff] %vm935_vm4, %v870_v14 }
 0x141   : > { %954 = vst.msk [vmem:[#allocation3 + $0x90] sm:$0xff] %vm935_vm4, %v876_v17  ;;  %1042 = vrot.lane.b32.xlu1 %v973_v12, %s2520_s22 }
 0x142   : > { %1044 = vrot.lane.b32.xlu0 %v3183_v50, %s2520_s22 }
 0x143   : > { %v874_v16 = vpop.permute.xlu1 %873 }
 0x144   : > { %v880_v52 = vpop.permute.xlu0 %879  ;;  %953 = vst.msk [vmem:[#allocation3 + $0x88] sm:$0xff] %vm935_vm4, %v874_v16  ;;  %v3297_v16 = vld [vmem:[#allocation2 + $0x151] sm:$0xff] }
 0x145   : > { %956 = vst.msk [vmem:[#allocation3 + $0xa0] sm:$0xff] %vm935_vm4, %v880_v52  ;;  %1074 = vrot.lane.b32.xlu1 %v2840_v36, %s2520_s22 }
 0x146   : > { %1076 = vrot.lane.b32.xlu0 %v2826_v33, %s2520_s22  ;;  %v3711_v33 = vld [vmem:[#allocation4_spill] sm:$0xff] }
 0x147   : > { %v878_v28 = vpop.permute.xlu1 %877 }
 0x148   : > { %v884_v19 = vpop.permute.xlu0 %883  ;;  %955 = vst.msk [vmem:[#allocation3 + $0x98] sm:$0xff] %vm935_vm4, %v878_v28  ;;  %v3304_v28 = vld [vmem:[#allocation2 + $0x99] sm:$0xff] }
 0x149   : > { %958 = vst.msk [vmem:[#allocation3 + $0xb0] sm:$0xff] %vm935_vm4, %v884_v19  ;;  %1046 = vrot.lane.b32.xlu1 %v3196_v29, %s2520_s22 }
 0x14a   : > { %1233 = vrot.lane.b32.xlu0 %v2881_v60, %s2521_s23  ;;  %v3712_v60 = vld [vmem:[#allocation5_spill] sm:$0xff] }
 0x14b   : > { %v882_v42 = vpop.permute.xlu1 %881 }
 0x14c   : > { %v888_v55 = vpop.permute.xlu0 %887  ;;  %957 = vst.msk [vmem:[#allocation3 + $0xa8] sm:$0xff] %vm935_vm4, %v882_v42 }
 0x14d   : > { %960 = vst.msk [vmem:[#allocation3 + $0xc0] sm:$0xff] %vm935_vm4, %v888_v55  ;;  %1078 = vrot.lane.b32.xlu1 %v3711_v33, %s2520_s22  ;;  %v3311_v55 = vld [vmem:[#allocation2 + $0x159] sm:$0xff] }
 0x14e   : > { %1265 = vrot.lane.b32.xlu0 %v2921_v57, %s2521_s23  ;;  %v3713_v57 = vld [vmem:[#allocation7_spill] sm:$0xff] }
 0x14f   : > { %v886_v36 = vpop.permute.xlu1 %885 }
 0x150   : > { %v892_v18 = vpop.permute.xlu0 %891  ;;  %959 = vst.msk [vmem:[#allocation3 + $0xb8] sm:$0xff] %vm935_vm4, %v886_v36 }
 0x151   : > { %962 = vst.msk [vmem:[#allocation3 + $0xd0] sm:$0xff] %vm935_vm4, %v892_v18  ;;  %1235 = vrot.lane.b32.xlu1 %v2895_v3, %s2521_s23  ;;  %v3714_v3 = vld [vmem:[#allocation6_spill] sm:$0xff]  ;;  %v3318_v18 = vld [vmem:[#allocation2 + $0x92] sm:$0xff] }
 0x152   : > { %1237 = vrot.lane.b32.xlu0 %v3712_v60, %s2521_s23 }
 0x153   : > { %v890_v46 = vpop.permute.xlu1 %889 }
 0x154   : > { %v896_v47 = vpop.permute.xlu0 %895  ;;  %961 = vst.msk [vmem:[#allocation3 + $0xc8] sm:$0xff] %vm935_vm4, %v890_v46 }
 0x155   : > { %964 = vst.msk [vmem:[#allocation3 + $0xe0] sm:$0xff] %vm935_vm4, %v896_v47  ;;  %1267 = vrot.lane.b32.xlu1 %v2935_v41, %s2521_s23  ;;  %v3325_v47 = vld [vmem:[#allocation2 + $0x152] sm:$0xff] }
 0x156   : > { %1269 = vrot.lane.b32.xlu0 %v3713_v57, %s2521_s23 }
 0x157   : > { %v894_v59 = vpop.permute.xlu1 %893 }
 0x158   : > { %v900_v63 = vpop.permute.xlu0 %899  ;;  %963 = vst.msk [vmem:[#allocation3 + $0xd8] sm:$0xff] %vm935_vm4, %v894_v59 }
 0x159   : > { %966 = vst.msk [vmem:[#allocation3 + $0xf0] sm:$0xff] %vm935_vm4, %v900_v63  ;;  %1239 = vrot.lane.b32.xlu1 %v3714_v3, %s2521_s23  ;;  %v3332_v63 = vld [vmem:[#allocation2 + $0x9a] sm:$0xff]  ;;  %v1363_v3 = vld [vmem:[#allocation2 + $0x90] sm:$0xff] }
 0x15a   : > { %1427 = vrot.lane.b32.xlu0 %v2728_v6, %s2522_s24 }
 0x15b   : > { %v898_v49 = vpop.permute.xlu1 %897 }
 0x15c   : > { %v1033_v0 = vpop.permute.xlu0 %1032  ;;  %965 = vst.msk [vmem:[#allocation3 + $0xe8] sm:$0xff] %vm935_vm4, %v898_v49 }
 0x15d   : > { %1129 = vst.msk [vmem:[#allocation3] sm:$0xff] %vm1128_vm6, %v1033_v0  ;;  %1271 = vrot.lane.b32.xlu1 %v2941_v44, %s2521_s23 }
 0x15e   : > { %1459 = vrot.lane.b32.xlu0 %v2804_v26, %s2522_s24 }
 0x15f   : > { %v902_v41 = vpop.permute.xlu1 %901 }
 0x160   : > { %v1037_v1 = vpop.permute.xlu0 %1036  ;;  %967 = vst.msk [vmem:[#allocation3 + $0xf8] sm:$0xff] %vm935_vm4, %v902_v41 }
 0x161   : > { %1131 = vst.msk [vmem:[#allocation3 + $0x10] sm:$0xff] %vm1128_vm6, %v1037_v1  ;;  %1429 = vrot.lane.b32.xlu1 %v2730_v7, %s2522_s24  ;;  %v1568_v7 = vld [vmem:[#allocation2 + $0x121] sm:$0xff] }
 0x162   : > { %1431 = vrot.lane.b32.xlu0 %v2732_v8, %s2522_s24  ;;  %v3339_v1 = vld [vmem:[#allocation2 + $0x15a] sm:$0xff] }
 0x163   : > { %v1035_v6 = vpop.permute.xlu1 %1034 }
 0x164   : > { %v1067_v45 = vpop.permute.xlu0 %1066  ;;  %1130 = vst.msk [vmem:[#allocation3 + $0x8] sm:$0xff] %vm1128_vm6, %v1035_v6 }
 0x165   : > { %1146 = vst.msk [vmem:[#allocation3 + $0x88] sm:$0xff] %vm1128_vm6, %v1067_v45  ;;  %1461 = vrot.lane.b32.xlu1 %v2806_v27, %s2522_s24  ;;  %v1554_v27 = vld [vmem:[#allocation2 + $0x79] sm:$0xff] }
 0x166   : > { %1463 = vrot.lane.b32.xlu0 %v2820_v30, %s2522_s24 }
 0x167   : > { %v1065_v26 = vpop.permute.xlu1 %1064 }
 0x168   : > { %v1069_v44 = vpop.permute.xlu0 %1068  ;;  %1145 = vst.msk [vmem:[#allocation3 + $0x80] sm:$0xff] %vm1128_vm6, %v1065_v26 }
 0x169   : > { %1147 = vst.msk [vmem:[#allocation3 + $0x90] sm:$0xff] %vm1128_vm6, %v1069_v44  ;;  %1433 = vrot.lane.b32.xlu1 %v2740_v9, %s2522_s24  ;;  %v1569_v9 = vld [vmem:[#allocation2 + $0x129] sm:$0xff] }
 0x16a   : > { %1620 = vrot.lane.b32.xlu0 %v3183_v50, %s2523_s25  ;;  %v3290_v50 = vld [vmem:[#allocation2 + $0x91] sm:$0xff] }
 0x16b   : > { %v1039_v8 = vpop.permute.xlu1 %1038 }
 0x16c   : > { %v1226_v20 = vpop.permute.xlu0 %1225  ;;  %1132 = vst.msk [vmem:[#allocation3 + $0x18] sm:$0xff] %vm1128_vm6, %v1039_v8  ;;  %v1364_v8 = vld [vmem:[#allocation2 + $0x98] sm:$0xff] }
 0x16d   : > { %1322 = vst.msk [vmem:[#allocation3] sm:$0xff] %vm1321_vm7, %v1226_v20  ;;  %1465 = vrot.lane.b32.xlu1 %v2822_v31, %s2522_s24  ;;  %v1555_v31 = vld [vmem:[#allocation2 + $0x81] sm:$0xff] }
 0x16e   : > { %1652 = vrot.lane.b32.xlu0 %v1568_v7, %s2523_s25  ;;  %v1365_v20 = vld [vmem:[#allocation2 + $0xa8] sm:$0xff] }
 0x16f   : > { %v1071_v30 = vpop.permute.xlu1 %1070 }
 0x170   : > { %v1258_v43 = vpop.permute.xlu0 %1257  ;;  %1148 = vst.msk [vmem:[#allocation3 + $0x98] sm:$0xff] %vm1128_vm6, %v1071_v30 }
 0x171   : > { %1338 = vst.msk [vmem:[#allocation3 + $0x80] sm:$0xff] %vm1321_vm7, %v1258_v43  ;;  %1622 = vrot.lane.b32.xlu1 %v3196_v29, %s2523_s25 }
 0x172   : > { %1624 = vrot.lane.b32.xlu0 %v1554_v27, %s2523_s25 }
 0x173   : > { %v1228_v4 = vpop.permute.xlu1 %1227 }
 0x174   : > { %v1230_v21 = vpop.permute.xlu0 %1229  ;;  %1323 = vst.msk [vmem:[#allocation3 + $0x8] sm:$0xff] %vm1321_vm7, %v1228_v4 }
 0x175   : > { %1324 = vst.msk [vmem:[#allocation3 + $0x10] sm:$0xff] %vm1321_vm7, %v1230_v21  ;;  %1654 = vrot.lane.b32.xlu1 %v1569_v9, %s2523_s25 }
 0x176   : > { %1656 = vrot.lane.b32.xlu0 %v1570_v2, %s2523_s25 }
 0x177   : > { %v1260_v51 = vpop.permute.xlu1 %1259 }
 0x178   : > { %v1262_v5 = vpop.permute.xlu0 %1261  ;;  %1339 = vst.msk [vmem:[#allocation3 + $0x88] sm:$0xff] %vm1321_vm7, %v1260_v51  ;;  %v1366_v51 = vld [vmem:[#allocation2 + $0xb0] sm:$0xff] }
 0x179   : > { %1340 = vst.msk [vmem:[#allocation3 + $0x90] sm:$0xff] %vm1321_vm7, %v1262_v5  ;;  %1626 = vrot.lane.b32.xlu1 %v1555_v31, %s2523_s25 }
 0x17a   : > { %1813 = vrot.lane.b32.xlu0 %v1745_v22, %s2524_s28 }
 0x17b   : > { %v1232_v53 = vpop.permute.xlu1 %1231 }
 0x17c   : > { %v1420_v54 = vpop.permute.xlu0 %1419  ;;  %1325 = vst.msk [vmem:[#allocation3 + $0x18] sm:$0xff] %vm1321_vm7, %v1232_v53 }
 0x17d   : > { %1516 = vst.msk [vmem:[#allocation3] sm:$0xff] %vm1515_vm8, %v1420_v54  ;;  %1658 = vrot.lane.b32.xlu1 %v1571_v23, %s2523_s25  ;;  %v1558_v54 = vld [vmem:[#allocation2 + $0xa9] sm:$0xff] }
 0x17e   : > { %1845 = vrot.lane.b32.xlu0 %v1761_v25, %s2524_s28 }
 0x17f   : > { %v1264_v56 = vpop.permute.xlu1 %1263 }
 0x180   : > { %v1452_v58 = vpop.permute.xlu0 %1451  ;;  %1341 = vst.msk [vmem:[#allocation3 + $0x98] sm:$0xff] %vm1321_vm7, %v1264_v56  ;;  %v1574_v56 = vld [vmem:[#allocation2 + $0x169] sm:$0xff] }
 0x181   : > { %1532 = vst.msk [vmem:[#allocation3 + $0x80] sm:$0xff] %vm1515_vm8, %v1452_v58  ;;  %1815 = vrot.lane.b32.xlu1 %v1746_v32, %s2524_s28 }
 0x182   : > { %1817 = vrot.lane.b32.xlu0 %v1747_v40, %s2524_s28 }
 0x183   : > { %v1422_v10 = vpop.permute.xlu1 %1421 }
 0x184   : > { %v1424_v62 = vpop.permute.xlu0 %1423  ;;  %1517 = vst.msk [vmem:[#allocation3 + $0x8] sm:$0xff] %vm1515_vm8, %v1422_v10 }
 0x185   : > { %1518 = vst.msk [vmem:[#allocation3 + $0x10] sm:$0xff] %vm1515_vm8, %v1424_v62  ;;  %1847 = vrot.lane.b32.xlu1 %v1762_v24, %s2524_s28  ;;  %v1575_v62 = vld [vmem:[#allocation2 + $0x171] sm:$0xff] }
 0x186   : > { %1849 = vrot.lane.b32.xlu0 %v1763_v48, %s2524_s28 }
 0x187   : > { %v1454_v13 = vpop.permute.xlu1 %1453 }
 0x188   : > { %v1456_v37 = vpop.permute.xlu0 %1455  ;;  %1533 = vst.msk [vmem:[#allocation3 + $0x88] sm:$0xff] %vm1515_vm8, %v1454_v13 }
 0x189   : > { %1534 = vst.msk [vmem:[#allocation3 + $0x90] sm:$0xff] %vm1515_vm8, %v1456_v37  ;;  %1819 = vrot.lane.b32.xlu1 %v1748_v61, %s2524_s28  ;;  %v1751_v37 = vld [vmem:[#allocation2 + $0xaa] sm:$0xff] }
 0x18a   : > { %1048 = vrot.lane.b32.xlu0 %v1554_v27, %s2520_s22 }
 0x18b   : > { %v1426_v15 = vpop.permute.xlu1 %1425 }
 0x18c   : > { %v1613_v12 = vpop.permute.xlu0 %1612  ;;  %1519 = vst.msk [vmem:[#allocation3 + $0x18] sm:$0xff] %vm1515_vm8, %v1426_v15 }
 0x18d   : > { %1709 = vst.msk [vmem:[#allocation3] sm:$0xff] %vm1708_vm9, %v1613_v12  ;;  %1851 = vrot.lane.b32.xlu1 %v1764_v11, %s2524_s28  ;;  %v1767_v12 = vld [vmem:[#allocation2 + $0x16a] sm:$0xff] }
 0x18e   : > { %1080 = vrot.lane.b32.xlu0 %v1570_v2, %s2520_s22 }
 0x18f   : > { %v1458_v14 = vpop.permute.xlu1 %1457 }
 0x190   : > { %v1645_v17 = vpop.permute.xlu0 %1644  ;;  %1535 = vst.msk [vmem:[#allocation3 + $0x98] sm:$0xff] %vm1515_vm8, %v1458_v14 }
 0x191   : > { %1725 = vst.msk [vmem:[#allocation3 + $0x80] sm:$0xff] %vm1708_vm9, %v1645_v17  ;;  %1050 = vrot.lane.b32.xlu1 %v1555_v31, %s2520_s22  ;;  %v1752_v17 = vld [vmem:[#allocation2 + $0xb2] sm:$0xff] }
 0x192   : > { %1052 = vrot.lane.b32.xlu0 %v3290_v50, %s2520_s22 }
 0x193   : > { %v1615_v52 = vpop.permute.xlu1 %1614 }
 0x194   : > { %v1617_v29 = vpop.permute.xlu0 %1616  ;;  %1710 = vst.msk [vmem:[#allocation3 + $0x8] sm:$0xff] %vm1708_vm9, %v1615_v52 }
 0x195   : > { %1711 = vst.msk [vmem:[#allocation3 + $0x10] sm:$0xff] %vm1708_vm9, %v1617_v29  ;;  %1082 = vrot.lane.b32.xlu1 %v1571_v23, %s2520_s22  ;;  %v1768_v29 = vld [vmem:[#allocation2 + $0x172] sm:$0xff] }
 0x196   : > { %1084 = vrot.lane.b32.xlu0 %v3297_v16, %s2520_s22 }
 0x197   : > { %v1647_v19 = vpop.permute.xlu1 %1646 }
 0x198   : > { %v1649_v42 = vpop.permute.xlu0 %1648  ;;  %1726 = vst.msk [vmem:[#allocation3 + $0x88] sm:$0xff] %vm1708_vm9, %v1647_v19 }
 0x199   : > { %1727 = vst.msk [vmem:[#allocation3 + $0x90] sm:$0xff] %vm1708_vm9, %v1649_v42  ;;  %1054 = vrot.lane.b32.xlu1 %v3304_v28, %s2520_s22  ;;  %v3410_v42 = vld [vmem:[#allocation2 + $0xc1] sm:$0xff] }
 0x19a   : > { %1241 = vrot.lane.b32.xlu0 %v1747_v40, %s2521_s23 }
 0x19b   : > { %v1619_v33 = vpop.permute.xlu1 %1618 }
 0x19c   : > { %v1806_v36 = vpop.permute.xlu0 %1805  ;;  %1712 = vst.msk [vmem:[#allocation3 + $0x18] sm:$0xff] %vm1708_vm9, %v1619_v33 }
 0x19d   : > { %1902 = vst.msk [vmem:[#allocation3] sm:$0xff] %vm1901_vm10, %v1806_v36  ;;  %1086 = vrot.lane.b32.xlu1 %v3311_v55, %s2520_s22  ;;  %v3417_v36 = vld [vmem:[#allocation2 + $0x181] sm:$0xff] }
 0x19e   : > { %1273 = vrot.lane.b32.xlu0 %v1763_v48, %s2521_s23 }
 0x19f   : > { %v1651_v60 = vpop.permute.xlu1 %1650 }
 0x1a0   : > { %v1838_v46 = vpop.permute.xlu0 %1837  ;;  %1728 = vst.msk [vmem:[#allocation3 + $0x98] sm:$0xff] %vm1708_vm9, %v1651_v60 }
 0x1a1   : > { %1918 = vst.msk [vmem:[#allocation3 + $0x80] sm:$0xff] %vm1901_vm10, %v1838_v46  ;;  %1243 = vrot.lane.b32.xlu1 %v1748_v61, %s2521_s23  ;;  %v3424_v46 = vld [vmem:[#allocation2 + $0xc9] sm:$0xff] }
 0x1a2   : > { %1245 = vrot.lane.b32.xlu0 %v3318_v18, %s2521_s23 }
 0x1a3   : > { %v1808_v57 = vpop.permute.xlu1 %1807 }
 0x1a4   : > { %v1810_v59 = vpop.permute.xlu0 %1809  ;;  %1903 = vst.msk [vmem:[#allocation3 + $0x8] sm:$0xff] %vm1901_vm10, %v1808_v57  ;;  %v1934_v41 = vld [vmem:[#allocation3] sm:$0xff] }
 0x1a5   : > { %1904 = vst.msk [vmem:[#allocation3 + $0x10] sm:$0xff] %vm1901_vm10, %v1810_v59  ;;  %1275 = vrot.lane.b32.xlu1 %v1764_v11, %s2521_s23  ;;  %v3431_v59 = vld [vmem:[#allocation2 + $0x189] sm:$0xff] }
 0x1a6   : > { %1277 = vrot.lane.b32.xlu0 %v3325_v47, %s2521_s23 }
 0x1a7   : > { %v1840_v49 = vpop.permute.xlu1 %1839 }
 0x1a8   : > { %v1842_v0 = vpop.permute.xlu0 %1841  ;;  %1919 = vst.msk [vmem:[#allocation3 + $0x88] sm:$0xff] %vm1901_vm10, %v1840_v49  ;;  %v1950_v7 = vld [vmem:[#allocation3 + $0x80] sm:$0xff]  ;;  %v3438_v49 = vld [vmem:[#allocation2 + $0xc2] sm:$0xff] }
 0x1a9   : > { %1920 = vst.msk [vmem:[#allocation3 + $0x90] sm:$0xff] %vm1901_vm10, %v1842_v0  ;;  %1247 = vrot.lane.b32.xlu1 %v3332_v63, %s2521_s23 }
 0x1aa   : > { %1435 = vrot.lane.b32.xlu0 %v1363_v3, %s2522_s24 }
 0x1ab   : > { %v1812_v6 = vpop.permute.xlu1 %1811  ;;  %v1935_v45 = vld [vmem:[#allocation3 + $0x8] sm:$0xff] }
 0x1ac   : > { %v1041_v26 = vpop.permute.xlu0 %1040  ;;  %1905 = vst.msk [vmem:[#allocation3 + $0x18] sm:$0xff] %vm1901_vm10, %v1812_v6  ;;  %v1966_v44 = vpack.c.bf16 %v1935_v45, %v1934_v41  ;;  %v1936_v2 = vld [vmem:[#allocation3 + $0x10] sm:$0xff] }
 0x1ad   : > { %1133 = vst.msk [vmem:[#allocation3 + $0x20] sm:$0xff] %vm1128_vm6, %v1041_v26  ;;  %1279 = vrot.lane.b32.xlu1 %v3339_v1, %s2521_s23  ;;  %v3452_v26 = vld [vmem:[#allocation2 + $0xca] sm:$0xff] }
 0x1ae   : > { %1467 = vrot.lane.b32.xlu0 %v2836_v34, %s2522_s24  ;;  %2448 = vmatprep.mubr.msk.bf16.mxu0 %vm2009_vm11, %v1966_v44  ;;  %v1367_v44 = vld [vmem:[#allocation2 + $0xc0] sm:$0xff] }
 0x1af   : > { %v1844_v27 = vpop.permute.xlu1 %1843  ;;  %v1951_v30 = vld [vmem:[#allocation3 + $0x88] sm:$0xff] }
 0x1b0   : > { %v1073_v43 = vpop.permute.xlu0 %1072  ;;  %1921 = vst.msk [vmem:[#allocation3 + $0x98] sm:$0xff] %vm1901_vm10, %v1844_v27  ;;  %v1974_v9 = vpack.c.bf16 %v1951_v30, %v1950_v7  ;;  %v1952_v22 = vld [vmem:[#allocation3 + $0x90] sm:$0xff]  ;;  %v3459_v27 = vld [vmem:[#allocation2 + $0x18a] sm:$0xff] }
 0x1b1   : > { %1149 = vst.msk [vmem:[#allocation3 + $0xa0] sm:$0xff] %vm1128_vm6, %v1073_v43  ;;  %1437 = vrot.lane.b32.xlu1 %v1364_v8, %s2522_s24  ;;  %v1383_v30 = vld [vmem:[#allocation2 + $0x180] sm:$0xff] }
 0x1b2   : > { %1439 = vrot.lane.b32.xlu0 %v1365_v20, %s2522_s24  ;;  %2464 = vmatprep.mubr.msk.bf16.mxu1 %vm2009_vm11, %v1974_v9 }
 0x1b3   : > { %v1043_v34 = vpop.permute.xlu1 %1042  ;;  %v1937_v4 = vld [vmem:[#allocation3 + $0x18] sm:$0xff] }
 0x1b4   : > { %v1045_v21 = vpop.permute.xlu0 %1044  ;;  %1134 = vst.msk [vmem:[#allocation3 + $0x28] sm:$0xff] %vm1128_vm6, %v1043_v34  ;;  %v1967_v31 = vpack.c.bf16 %v1937_v4, %v1936_v2 }
 0x1b5   : > { %1135 = vst.msk [vmem:[#allocation3 + $0x30] sm:$0xff] %vm1128_vm6, %v1045_v21  ;;  %1469 = vrot.lane.b32.xlu1 %v2838_v35, %s2522_s24  ;;  %v1368_v21 = vld [vmem:[#allocation2 + $0xc8] sm:$0xff] }
 0x1b6   : > { %1471 = vrot.lane.b32.xlu0 %v2849_v38, %s2522_s24  ;;  %2449 = vmatmul.mubr.msk.bf16.vlgmr.msra.gmra.mrb[0].mxu0 %vm2009_vm11, %v1967_v31  ;;  %v1369_v31 = vld [vmem:[#allocation2 + $0xd8] sm:$0xff] }
 0x1b7   : > { %v1075_v5 = vpop.permute.xlu1 %1074  ;;  %v1953_v23 = vld [vmem:[#allocation3 + $0x98] sm:$0xff] }
 0x1b8   : > { %v1077_v25 = vpop.permute.xlu0 %1076  ;;  %1150 = vst.msk [vmem:[#allocation3 + $0xa8] sm:$0xff] %vm1128_vm6, %v1075_v5  ;;  %v1975_v53 = vpack.c.bf16 %v1953_v23, %v1952_v22 }
 0x1b9   : > { %1151 = vst.msk [vmem:[#allocation3 + $0xb0] sm:$0xff] %vm1128_vm6, %v1077_v25  ;;  %1441 = vrot.lane.b32.xlu1 %v1366_v51, %s2522_s24 }
 0x1ba   : > { %1628 = vrot.lane.b32.xlu0 %v3290_v50, %s2523_s25  ;;  %2465 = vmatmul.mubr.msk.bf16.vlgmr.msra.gmra.mrb[0].mxu1 %vm2009_vm11, %v1975_v53  ;;  %v1384_v53 = vld [vmem:[#allocation2 + $0x188] sm:$0xff] }
 0x1bb   : > { %v1047_v35 = vpop.permute.xlu1 %1046 }
 0x1bc   : > { %v1234_v38 = vpop.permute.xlu0 %1233  ;;  %1136 = vst.msk [vmem:[#allocation3 + $0x38] sm:$0xff] %vm1128_vm6, %v1047_v35  ;;  %v1385_v35 = vld [vmem:[#allocation2 + $0x198] sm:$0xff] }
 0x1bd   : > { %1326 = vst.msk [vmem:[#allocation3 + $0x20] sm:$0xff] %vm1321_vm7, %v1234_v38  ;;  %1473 = vrot.lane.b32.xlu1 %v2851_v39, %s2522_s24  ;;  %v1559_v39 = vld [vmem:[#allocation2 + $0xb1] sm:$0xff] }
 0x1be   : > { %1660 = vrot.lane.b32.xlu0 %v3297_v16, %s2523_s25 }
 0x1bf   : > { %v1079_v32 = vpop.permute.xlu1 %1078 }
 0x1c0   : > { %v1266_v40 = vpop.permute.xlu0 %1265  ;;  %1152 = vst.msk [vmem:[#allocation3 + $0xb8] sm:$0xff] %vm1128_vm6, %v1079_v32 }
 0x1c1   : > { %1342 = vst.msk [vmem:[#allocation3 + $0xa0] sm:$0xff] %vm1321_vm7, %v1266_v40  ;;  %1630 = vrot.lane.b32.xlu1 %v3304_v28, %s2523_s25 }
 0x1c2   : > { %1632 = vrot.lane.b32.xlu0 %v1558_v54, %s2523_s25 }
 0x1c3   : > { %v1236_v58 = vpop.permute.xlu1 %1235 }
 0x1c4   : > { %v1238_v24 = vpop.permute.xlu0 %1237  ;;  %1327 = vst.msk [vmem:[#allocation3 + $0x28] sm:$0xff] %vm1321_vm7, %v1236_v58  ;;  %v1370_v58 = vld [vmem:[#allocation2 + $0xe0] sm:$0xff] }
 0x1c5   : > { %1328 = vst.msk [vmem:[#allocation3 + $0x30] sm:$0xff] %vm1321_vm7, %v1238_v24  ;;  %1662 = vrot.lane.b32.xlu1 %v3311_v55, %s2523_s25 }
 0x1c6   : > { %1664 = vrot.lane.b32.xlu0 %v1574_v56, %s2523_s25 }
 0x1c7   : > { %v1268_v48 = vpop.permute.xlu1 %1267 }
 0x1c8   : > { %v1270_v10 = vpop.permute.xlu0 %1269  ;;  %1343 = vst.msk [vmem:[#allocation3 + $0xa8] sm:$0xff] %vm1321_vm7, %v1268_v48 }
 0x1c9   : > { %1344 = vst.msk [vmem:[#allocation3 + $0xb0] sm:$0xff] %vm1321_vm7, %v1270_v10  ;;  %1634 = vrot.lane.b32.xlu1 %v1559_v39, %s2523_s25 }
 0x1ca   : > { %1821 = vrot.lane.b32.xlu0 %v3318_v18, %s2524_s28 }
 0x1cb   : > { %v1240_v61 = vpop.permute.xlu1 %1239 }
 0x1cc   : > { %v1428_v13 = vpop.permute.xlu0 %1427  ;;  %1329 = vst.msk [vmem:[#allocation3 + $0x38] sm:$0xff] %vm1321_vm7, %v1240_v61 }
 0x1cd   : > { %1520 = vst.msk [vmem:[#allocation3 + $0x20] sm:$0xff] %vm1515_vm8, %v1428_v13  ;;  %1666 = vrot.lane.b32.xlu1 %v1575_v62, %s2523_s25 }
 0x1ce   : > { %1853 = vrot.lane.b32.xlu0 %v3325_v47, %s2524_s28 }
 0x1cf   : > { %v1272_v11 = vpop.permute.xlu1 %1271 }
 0x1d0   : > { %v1460_v15 = vpop.permute.xlu0 %1459  ;;  %1345 = vst.msk [vmem:[#allocation3 + $0xb8] sm:$0xff] %vm1321_vm7, %v1272_v11 }
 0x1d1   : > { %1536 = vst.msk [vmem:[#allocation3 + $0xa0] sm:$0xff] %vm1515_vm8, %v1460_v15  ;;  %1823 = vrot.lane.b32.xlu1 %v3332_v63, %s2524_s28 }
 0x1d2   : > { %1825 = vrot.lane.b32.xlu0 %v1751_v37, %s2524_s28 }
 0x1d3   : > { %v1430_v50 = vpop.permute.xlu1 %1429 }
 0x1d4   : > { %v1432_v14 = vpop.permute.xlu0 %1431  ;;  %1521 = vst.msk [vmem:[#allocation3 + $0x28] sm:$0xff] %vm1515_vm8, %v1430_v50 }
 0x1d5   : > { %1522 = vst.msk [vmem:[#allocation3 + $0x30] sm:$0xff] %vm1515_vm8, %v1432_v14  ;;  %1855 = vrot.lane.b32.xlu1 %v3339_v1, %s2524_s28  ;;  %v3445_v1 = vld [vmem:[#allocation2 + $0x182] sm:$0xff] }
 0x1d6   : > { %1857 = vrot.lane.b32.xlu0 %v1767_v12, %s2524_s28 }
 0x1d7   : > { %v1462_v16 = vpop.permute.xlu1 %1461 }
 0x1d8   : > { %v1464_v52 = vpop.permute.xlu0 %1463  ;;  %1537 = vst.msk [vmem:[#allocation3 + $0xa8] sm:$0xff] %vm1515_vm8, %v1462_v16 }
 0x1d9   : > { %1538 = vst.msk [vmem:[#allocation3 + $0xb0] sm:$0xff] %vm1515_vm8, %v1464_v52  ;;  %1827 = vrot.lane.b32.xlu1 %v1752_v17, %s2524_s28 }
 0x1da   : > { %1056 = vrot.lane.b32.xlu0 %v1558_v54, %s2520_s22 }
 0x1db   : > { %v1434_v28 = vpop.permute.xlu1 %1433 }
 0x1dc   : > { %v1621_v19 = vpop.permute.xlu0 %1620  ;;  %1523 = vst.msk [vmem:[#allocation3 + $0x38] sm:$0xff] %vm1515_vm8, %v1434_v28 }
 0x1dd   : > { %1713 = vst.msk [vmem:[#allocation3 + $0x20] sm:$0xff] %vm1708_vm9, %v1621_v19  ;;  %1859 = vrot.lane.b32.xlu1 %v1768_v29, %s2524_s28 }
 0x1de   : > { %1088 = vrot.lane.b32.xlu0 %v1574_v56, %s2520_s22 }
 0x1df   : > { %v1466_v55 = vpop.permute.xlu1 %1465 }
 0x1e0   : > { %v1653_v33 = vpop.permute.xlu0 %1652  ;;  %1539 = vst.msk [vmem:[#allocation3 + $0xb8] sm:$0xff] %vm1515_vm8, %v1466_v55 }
 0x1e1   : > { %1729 = vst.msk [vmem:[#allocation3 + $0xa0] sm:$0xff] %vm1708_vm9, %v1653_v33  ;;  %1058 = vrot.lane.b32.xlu1 %v1559_v39, %s2520_s22 }
 0x1e2   : > { %1060 = vrot.lane.b32.xlu0 %v3410_v42, %s2520_s22 }
 0x1e3   : > { %v1623_v18 = vpop.permute.xlu1 %1622 }
 0x1e4   : > { %v1625_v60 = vpop.permute.xlu0 %1624  ;;  %1714 = vst.msk [vmem:[#allocation3 + $0x28] sm:$0xff] %vm1708_vm9, %v1623_v18 }
 0x1e5   : > { %1715 = vst.msk [vmem:[#allocation3 + $0x30] sm:$0xff] %vm1708_vm9, %v1625_v60  ;;  %1090 = vrot.lane.b32.xlu1 %v1575_v62, %s2520_s22  ;;  %v1386_v62 = vld [vmem:[#allocation2 + $0x1a0] sm:$0xff] }
 0x1e6   : > { %1092 = vrot.lane.b32.xlu0 %v3417_v36, %s2520_s22 }
 0x1e7   : > { %v1655_v47 = vpop.permute.xlu1 %1654 }
 0x1e8   : > { %v1657_v57 = vpop.permute.xlu0 %1656  ;;  %1730 = vst.msk [vmem:[#allocation3 + $0xa8] sm:$0xff] %vm1708_vm9, %v1655_v47 }
 0x1e9   : > { %1731 = vst.msk [vmem:[#allocation3 + $0xb0] sm:$0xff] %vm1708_vm9, %v1657_v57  ;;  %1062 = vrot.lane.b32.xlu1 %v3424_v46, %s2520_s22 }
 0x1ea   : > { %1249 = vrot.lane.b32.xlu0 %v1751_v37, %s2521_s23  ;;  %v1562_v37 = vld [vmem:[#allocation2 + $0xd9] sm:$0xff] }
 0x1eb   : > { %v1627_v63 = vpop.permute.xlu1 %1626 }
 0x1ec   : > { %v1814_v3 = vpop.permute.xlu0 %1813  ;;  %1716 = vst.msk [vmem:[#allocation3 + $0x38] sm:$0xff] %vm1708_vm9, %v1627_v63 }
 0x1ed   : > { %1906 = vst.msk [vmem:[#allocation3 + $0x20] sm:$0xff] %vm1901_vm10, %v1814_v3  ;;  %1094 = vrot.lane.b32.xlu1 %v3431_v59, %s2520_s22 }
 0x1ee   : > { %1281 = vrot.lane.b32.xlu0 %v1767_v12, %s2521_s23  ;;  %v1578_v12 = vld [vmem:[#allocation2 + $0x199] sm:$0xff] }
 0x1ef   : > { %v1659_v0 = vpop.permute.xlu1 %1658 }
 0x1f0   : > { %v1846_v41 = vpop.permute.xlu0 %1845  ;;  %1732 = vst.msk [vmem:[#allocation3 + $0xb8] sm:$0xff] %vm1708_vm9, %v1659_v0 }
 0x1f1   : > { %1922 = vst.msk [vmem:[#allocation3 + $0xa0] sm:$0xff] %vm1901_vm10, %v1846_v41  ;;  %1251 = vrot.lane.b32.xlu1 %v1752_v17, %s2521_s23  ;;  %v1563_v17 = vld [vmem:[#allocation2 + $0xe1] sm:$0xff] }
 0x1f2   : > { %1253 = vrot.lane.b32.xlu0 %v3438_v49, %s2521_s23 }
 0x1f3   : > { %v1816_v6 = vpop.permute.xlu1 %1815 }
 0x1f4   : > { %v1818_v45 = vpop.permute.xlu0 %1817  ;;  %1907 = vst.msk [vmem:[#allocation3 + $0x28] sm:$0xff] %vm1901_vm10, %v1816_v6  ;;  %v1938_v20 = vld [vmem:[#allocation3 + $0x20] sm:$0xff] }
 0x1f5   : > { %1908 = vst.msk [vmem:[#allocation3 + $0x30] sm:$0xff] %vm1901_vm10, %v1818_v45  ;;  %1283 = vrot.lane.b32.xlu1 %v1768_v29, %s2521_s23  ;;  %v1579_v29 = vld [vmem:[#allocation2 + $0x1a1] sm:$0xff] }
 0x1f6   : > { %1285 = vrot.lane.b32.xlu0 %v3445_v1, %s2521_s23 }
 0x1f7   : > { %v1848_v7 = vpop.permute.xlu1 %1847 }
 0x1f8   : > { %v1850_v8 = vpop.permute.xlu0 %1849  ;;  %1923 = vst.msk [vmem:[#allocation3 + $0xa8] sm:$0xff] %vm1901_vm10, %v1848_v7  ;;  %v1954_v4 = vld [vmem:[#allocation3 + $0xa0] sm:$0xff] }
 0x1f9   : > { %1924 = vst.msk [vmem:[#allocation3 + $0xb0] sm:$0xff] %vm1901_vm10, %v1850_v8  ;;  %1255 = vrot.lane.b32.xlu1 %v3452_v26, %s2521_s23 }
 0x1fa   : > { %1443 = vrot.lane.b32.xlu0 %v1367_v44, %s2522_s24 }
 0x1fb   : > { %v1820_v43 = vpop.permute.xlu1 %1819  ;;  %v1939_v9 = vld [vmem:[#allocation3 + $0x28] sm:$0xff] }
 0x1fc   : > { %v1049_v2 = vpop.permute.xlu0 %1048  ;;  %1909 = vst.msk [vmem:[#allocation3 + $0x38] sm:$0xff] %vm1901_vm10, %v1820_v43  ;;  %v1968_v34 = vpack.c.bf16 %v1939_v9, %v1938_v20  ;;  %v1940_v25 = vld [vmem:[#allocation3 + $0x30] sm:$0xff] }
 0x1fd   : > { %1137 = vst.msk [vmem:[#allocation3 + $0x40] sm:$0xff] %vm1128_vm6, %v1049_v2  ;;  %1287 = vrot.lane.b32.xlu1 %v3459_v27, %s2521_s23 }
 0x1fe   : > { %1475 = vrot.lane.b32.xlu0 %v1383_v30, %s2522_s24  ;;  %2452 = vmatprep.mubr.msk.bf16.mxu0 %vm2009_vm11, %v1968_v34 }
 0x1ff   : > { %v1852_v22 = vpop.permute.xlu1 %1851  ;;  %v1955_v51 = vld [vmem:[#allocation3 + $0xa8] sm:$0xff] }
 0x200   : > { %v1081_v5 = vpop.permute.xlu0 %1080  ;;  %1925 = vst.msk [vmem:[#allocation3 + $0xb8] sm:$0xff] %vm1901_vm10, %v1852_v22  ;;  %v1976_v23 = vpack.c.bf16 %v1955_v51, %v1954_v4  ;;  %v1956_v56 = vld [vmem:[#allocation3 + $0xb0] sm:$0xff] }
 0x201   : > { %1153 = vst.msk [vmem:[#allocation3 + $0xc0] sm:$0xff] %vm1128_vm6, %v1081_v5  ;;  %1445 = vrot.lane.b32.xlu1 %v1368_v21, %s2522_s24 }
 0x202   : > { %1447 = vrot.lane.b32.xlu0 %v1369_v31, %s2522_s24  ;;  %2468 = vmatprep.mubr.msk.bf16.mxu1 %vm2009_vm11, %v1976_v23 }
 0x203   : > { %v1051_v38 = vpop.permute.xlu1 %1050  ;;  %v1941_v54 = vld [vmem:[#allocation3 + $0x38] sm:$0xff] }
 0x204   : > { %v1053_v32 = vpop.permute.xlu0 %1052  ;;  %1138 = vst.msk [vmem:[#allocation3 + $0x48] sm:$0xff] %vm1128_vm6, %v1051_v38  ;;  %v1969_v40 = vpack.c.bf16 %v1941_v54, %v1940_v25 }
 0x205   : > { %1139 = vst.msk [vmem:[#allocation3 + $0x50] sm:$0xff] %vm1128_vm6, %v1053_v32  ;;  %1477 = vrot.lane.b32.xlu1 %v1384_v53, %s2522_s24 }
 0x206   : > { %1479 = vrot.lane.b32.xlu0 %v1385_v35, %s2522_s24  ;;  %2453 = vmatmul.mubr.msk.bf16.gmra.mrb[4].mxu0 %vm2009_vm11, %v1969_v40 }
 0x207   : > { %v1083_v24 = vpop.permute.xlu1 %1082  ;;  %v1957_v39 = vld [vmem:[#allocation3 + $0xb8] sm:$0xff] }
 0x208   : > { %v1085_v48 = vpop.permute.xlu0 %1084  ;;  %1154 = vst.msk [vmem:[#allocation3 + $0xc8] sm:$0xff] %vm1128_vm6, %v1083_v24  ;;  %v1977_v10 = vpack.c.bf16 %v1957_v39, %v1956_v56 }
 0x209   : > { %1155 = vst.msk [vmem:[#allocation3 + $0xd0] sm:$0xff] %vm1128_vm6, %v1085_v48  ;;  %1449 = vrot.lane.b32.xlu1 %v1370_v58, %s2522_s24 }
 0x20a   : > { %1636 = vrot.lane.b32.xlu0 %v3410_v42, %s2523_s25  ;;  %2469 = vmatmul.mubr.msk.bf16.gmra.mrb[4].mxu1 %vm2009_vm11, %v1977_v10  ;;  %v1755_v42 = vld [vmem:[#allocation2 + $0xda] sm:$0xff] }
 0x20b   : > { %v1055_v61 = vpop.permute.xlu1 %1054 }
 0x20c   : > { %v1242_v13 = vpop.permute.xlu0 %1241  ;;  %1140 = vst.msk [vmem:[#allocation3 + $0x58] sm:$0xff] %vm1128_vm6, %v1055_v61 }
 0x20d   : > { %1330 = vst.msk [vmem:[#allocation3 + $0x40] sm:$0xff] %vm1321_vm7, %v1242_v13  ;;  %1481 = vrot.lane.b32.xlu1 %v1386_v62, %s2522_s24 }
 0x20e   : > { %1668 = vrot.lane.b32.xlu0 %v3417_v36, %s2523_s25  ;;  %v1771_v36 = vld [vmem:[#allocation2 + $0x19a] sm:$0xff] }
 0x20f   : > { %v1087_v11 = vpop.permute.xlu1 %1086 }
 0x210   : > { %v1274_v15 = vpop.permute.xlu0 %1273  ;;  %1156 = vst.msk [vmem:[#allocation3 + $0xd8] sm:$0xff] %vm1128_vm6, %v1087_v11 }
 0x211   : > { %1346 = vst.msk [vmem:[#allocation3 + $0xc0] sm:$0xff] %vm1321_vm7, %v1274_v15  ;;  %1638 = vrot.lane.b32.xlu1 %v3424_v46, %s2523_s25  ;;  %v1756_v46 = vld [vmem:[#allocation2 + $0xe2] sm:$0xff] }
 0x212   : > { %1640 = vrot.lane.b32.xlu0 %v1562_v37, %s2523_s25 }
 0x213   : > { %v1244_v50 = vpop.permute.xlu1 %1243 }
 0x214   : > { %v1246_v14 = vpop.permute.xlu0 %1245  ;;  %1331 = vst.msk [vmem:[#allocation3 + $0x48] sm:$0xff] %vm1321_vm7, %v1244_v50 }
 0x215   : > { %1332 = vst.msk [vmem:[#allocation3 + $0x50] sm:$0xff] %vm1321_vm7, %v1246_v14  ;;  %1670 = vrot.lane.b32.xlu1 %v3431_v59, %s2523_s25  ;;  %v1772_v59 = vld [vmem:[#allocation2 + $0x1a2] sm:$0xff] }
 0x216   : > { %1672 = vrot.lane.b32.xlu0 %v1578_v12, %s2523_s25 }
 0x217   : > { %v1276_v16 = vpop.permute.xlu1 %1275 }
 0x218   : > { %v1278_v52 = vpop.permute.xlu0 %1277  ;;  %1347 = vst.msk [vmem:[#allocation3 + $0xc8] sm:$0xff] %vm1321_vm7, %v1276_v16 }
 0x219   : > { %1348 = vst.msk [vmem:[#allocation3 + $0xd0] sm:$0xff] %vm1321_vm7, %v1278_v52  ;;  %1642 = vrot.lane.b32.xlu1 %v1563_v17, %s2523_s25 }
 0x21a   : > { %1829 = vrot.lane.b32.xlu0 %v3438_v49, %s2524_s28 }
 0x21b   : > { %v1248_v28 = vpop.permute.xlu1 %1247 }
 0x21c   : > { %v1436_v19 = vpop.permute.xlu0 %1435  ;;  %1333 = vst.msk [vmem:[#allocation3 + $0x58] sm:$0xff] %vm1321_vm7, %v1248_v28 }
 0x21d   : > { %1524 = vst.msk [vmem:[#allocation3 + $0x40] sm:$0xff] %vm1515_vm8, %v1436_v19  ;;  %1674 = vrot.lane.b32.xlu1 %v1579_v29, %s2523_s25 }
 0x21e   : > { %1861 = vrot.lane.b32.xlu0 %v3445_v1, %s2524_s28 }
 0x21f   : > { %v1280_v55 = vpop.permute.xlu1 %1279 }
 0x220   : > { %v1468_v33 = vpop.permute.xlu0 %1467  ;;  %1349 = vst.msk [vmem:[#allocation3 + $0xd8] sm:$0xff] %vm1321_vm7, %v1280_v55 }
 0x221   : > { %1540 = vst.msk [vmem:[#allocation3 + $0xc0] sm:$0xff] %vm1515_vm8, %v1468_v33  ;;  %1831 = vrot.lane.b32.xlu1 %v3452_v26, %s2524_s28 }
 0x222   : > { %1833 = vrot.lane.b32.xlu0 %v1755_v42, %s2524_s28 }
 0x223   : > { %v1438_v18 = vpop.permute.xlu1 %1437 }
 0x224   : > { %v1440_v60 = vpop.permute.xlu0 %1439  ;;  %1525 = vst.msk [vmem:[#allocation3 + $0x48] sm:$0xff] %vm1515_vm8, %v1438_v18 }
 0x225   : > { %1526 = vst.msk [vmem:[#allocation3 + $0x50] sm:$0xff] %vm1515_vm8, %v1440_v60  ;;  %1863 = vrot.lane.b32.xlu1 %v3459_v27, %s2524_s28  ;;  %v3576_v60 = vld [vmem:[%s3700_s2] ss:$0 sm:$0xff] }
 0x226   : > { %1865 = vrot.lane.b32.xlu0 %v1771_v36, %s2524_s28 }
 0x227   : > { %v1470_v47 = vpop.permute.xlu1 %1469 }
 0x228   : > { %v1472_v57 = vpop.permute.xlu0 %1471  ;;  %1541 = vst.msk [vmem:[#allocation3 + $0xc8] sm:$0xff] %vm1515_vm8, %v1470_v47 }
 0x229   : > { %1542 = vst.msk [vmem:[#allocation3 + $0xd0] sm:$0xff] %vm1515_vm8, %v1472_v57  ;;  %1835 = vrot.lane.b32.xlu1 %v1756_v46, %s2524_s28 }
 0x22b   : > { %v1442_v63 = vpop.permute.xlu1 %1441 }
 0x22c   : > { %v1629_v3 = vpop.permute.xlu0 %1628  ;;  %1527 = vst.msk [vmem:[#allocation3 + $0x58] sm:$0xff] %vm1515_vm8, %v1442_v63 }
 0x22d   : > { %1717 = vst.msk [vmem:[#allocation3 + $0x40] sm:$0xff] %vm1708_vm9, %v1629_v3  ;;  %1867 = vrot.lane.b32.xlu1 %v1772_v59, %s2524_s28 }
 0x22f   : > { %v1474_v49 = vpop.permute.xlu1 %1473 }
 0x230   : > { %v1661_v0 = vpop.permute.xlu0 %1660  ;;  %1543 = vst.msk [vmem:[#allocation3 + $0xd8] sm:$0xff] %vm1515_vm8, %v1474_v49 }
 0x231   : > { %1733 = vst.msk [vmem:[#allocation3 + $0xc0] sm:$0xff] %vm1708_vm9, %v1661_v0 }
 0x233   : > { %v1631_v41 = vpop.permute.xlu1 %1630 }
 0x234   : > { %v1633_v1 = vpop.permute.xlu0 %1632  ;;  %1718 = vst.msk [vmem:[#allocation3 + $0x48] sm:$0xff] %vm1708_vm9, %v1631_v41 }
 0x235   : > { %1719 = vst.msk [vmem:[#allocation3 + $0x50] sm:$0xff] %vm1708_vm9, %v1633_v1 }
 0x237   : > { %v1663_v6 = vpop.permute.xlu1 %1662 }
 0x238   : > { %v1665_v45 = vpop.permute.xlu0 %1664  ;;  %1734 = vst.msk [vmem:[#allocation3 + $0xc8] sm:$0xff] %vm1708_vm9, %v1663_v6 }
 0x239   : > { %1735 = vst.msk [vmem:[#allocation3 + $0xd0] sm:$0xff] %vm1708_vm9, %v1665_v45 }
 0x23b   : > { %v1635_v26 = vpop.permute.xlu1 %1634 }
 0x23c   : > { %v1822_v44 = vpop.permute.xlu0 %1821  ;;  %1720 = vst.msk [vmem:[#allocation3 + $0x58] sm:$0xff] %vm1708_vm9, %v1635_v26 }
 0x23d   : > { %1910 = vst.msk [vmem:[#allocation3 + $0x40] sm:$0xff] %vm1901_vm10, %v1822_v44 }
 0x23f   : > { %v1667_v7 = vpop.permute.xlu1 %1666 }
 0x240   : > { %v1854_v8 = vpop.permute.xlu0 %1853  ;;  %1736 = vst.msk [vmem:[#allocation3 + $0xd8] sm:$0xff] %vm1708_vm9, %v1667_v7 }
 0x241   : > { %1926 = vst.msk [vmem:[#allocation3 + $0xc0] sm:$0xff] %vm1901_vm10, %v1854_v8 }
 0x243   : > { %v1824_v20 = vpop.permute.xlu1 %1823 }
 0x244   : > { %v1826_v27 = vpop.permute.xlu0 %1825  ;;  %1911 = vst.msk [vmem:[#allocation3 + $0x48] sm:$0xff] %vm1901_vm10, %v1824_v20  ;;  %v1942_v9 = vld [vmem:[#allocation3 + $0x40] sm:$0xff] }
 0x245   : > { %1912 = vst.msk [vmem:[#allocation3 + $0x50] sm:$0xff] %vm1901_vm10, %v1826_v27 }
 0x247   : > { %v1856_v30 = vpop.permute.xlu1 %1855 }
 0x248   : > { %v1858_v43 = vpop.permute.xlu0 %1857  ;;  %1927 = vst.msk [vmem:[#allocation3 + $0xc8] sm:$0xff] %vm1901_vm10, %v1856_v30  ;;  %v1958_v31 = vld [vmem:[#allocation3 + $0xc0] sm:$0xff] }
 0x249   : > { %1928 = vst.msk [vmem:[#allocation3 + $0xd0] sm:$0xff] %vm1901_vm10, %v1858_v43 }
 0x24b   : > { %v1828_v2 = vpop.permute.xlu1 %1827  ;;  %v1943_v34 = vld [vmem:[#allocation3 + $0x48] sm:$0xff] }
 0x24c   : > { %v1057_v4 = vpop.permute.xlu0 %1056  ;;  %1913 = vst.msk [vmem:[#allocation3 + $0x58] sm:$0xff] %vm1901_vm10, %v1828_v2  ;;  %v1970_v21 = vpack.c.bf16 %v1943_v34, %v1942_v9  ;;  %v1944_v25 = vld [vmem:[#allocation3 + $0x50] sm:$0xff] }
 0x24d   : > { %1141 = vst.msk [vmem:[#allocation3 + $0x60] sm:$0xff] %vm1128_vm6, %v1057_v4 }
 0x24e   : > { %2456 = vmatprep.mubr.msk.bf16.mxu0 %vm2009_vm11, %v1970_v21 }
 0x24f   : > { %v1860_v22 = vpop.permute.xlu1 %1859  ;;  %v1959_v51 = vld [vmem:[#allocation3 + $0xc8] sm:$0xff] }
 0x250   : > { %v1089_v5 = vpop.permute.xlu0 %1088  ;;  %1929 = vst.msk [vmem:[#allocation3 + $0xd8] sm:$0xff] %vm1901_vm10, %v1860_v22  ;;  %v1978_v23 = vpack.c.bf16 %v1959_v51, %v1958_v31  ;;  %v1960_v32 = vld [vmem:[#allocation3 + $0xd0] sm:$0xff] }
 0x251   : > { %1157 = vst.msk [vmem:[#allocation3 + $0xe0] sm:$0xff] %vm1128_vm6, %v1089_v5 }
 0x252   : > { %2472 = vmatprep.mubr.msk.bf16.mxu1 %vm2009_vm11, %v1978_v23 }
 0x253   : > { %v1059_v53 = vpop.permute.xlu1 %1058  ;;  %v1945_v35 = vld [vmem:[#allocation3 + $0x58] sm:$0xff] }
 0x254   : > { %v1061_v38 = vpop.permute.xlu0 %1060  ;;  %1142 = vst.msk [vmem:[#allocation3 + $0x68] sm:$0xff] %vm1128_vm6, %v1059_v53  ;;  %v1971_v54 = vpack.c.bf16 %v1945_v35, %v1944_v25 }
 0x255   : > { %1143 = vst.msk [vmem:[#allocation3 + $0x70] sm:$0xff] %vm1128_vm6, %v1061_v38 }
 0x256   : > { %2457 = vmatmul.mubr.msk.bf16.gmra.mrb[8].mxu0 %vm2009_vm11, %v1971_v54 }
 0x257   : > { %v1091_v40 = vpop.permute.xlu1 %1090  ;;  %v1961_v56 = vld [vmem:[#allocation3 + $0xd8] sm:$0xff] }
 0x258   : > { %v1093_v58 = vpop.permute.xlu0 %1092  ;;  %1158 = vst.msk [vmem:[#allocation3 + $0xe8] sm:$0xff] %vm1128_vm6, %v1091_v40  ;;  %v1979_v24 = vpack.c.bf16 %v1961_v56, %v1960_v32 }
 0x259   : > { %1159 = vst.msk [vmem:[#allocation3 + $0xf0] sm:$0xff] %vm1128_vm6, %v1093_v58 }
 0x25a   : > { %2473 = vmatmul.mubr.msk.bf16.gmra.mrb[8].mxu1 %vm2009_vm11, %v1979_v24 }
 0x25b   : > { %v1063_v39 = vpop.permute.xlu1 %1062 }
 0x25c   : > { %v1250_v48 = vpop.permute.xlu0 %1249  ;;  %1144 = vst.msk [vmem:[#allocation3 + $0x78] sm:$0xff] %vm1128_vm6, %v1063_v39 }
 0x25d   : > { %1334 = vst.msk [vmem:[#allocation3 + $0x60] sm:$0xff] %vm1321_vm7, %v1250_v48 }
 0x25f   : > { %v1095_v10 = vpop.permute.xlu1 %1094 }
 0x260   : > { %v1282_v62 = vpop.permute.xlu0 %1281  ;;  %1160 = vst.msk [vmem:[#allocation3 + $0xf8] sm:$0xff] %vm1128_vm6, %v1095_v10 }
 0x261   : > { %1350 = vst.msk [vmem:[#allocation3 + $0xe0] sm:$0xff] %vm1321_vm7, %v1282_v62 }
 0x263   : > { %v1252_v61 = vpop.permute.xlu1 %1251 }
 0x264   : > { %v1254_v13 = vpop.permute.xlu0 %1253  ;;  %1335 = vst.msk [vmem:[#allocation3 + $0x68] sm:$0xff] %vm1321_vm7, %v1252_v61 }
 0x265   : > { %1336 = vst.msk [vmem:[#allocation3 + $0x70] sm:$0xff] %vm1321_vm7, %v1254_v13 }
 0x267   : > { %v1284_v37 = vpop.permute.xlu1 %1283 }
 0x268   : > { %v1286_v11 = vpop.permute.xlu0 %1285  ;;  %1351 = vst.msk [vmem:[#allocation3 + $0xe8] sm:$0xff] %vm1321_vm7, %v1284_v37 }
 0x269   : > { %1352 = vst.msk [vmem:[#allocation3 + $0xf0] sm:$0xff] %vm1321_vm7, %v1286_v11 }
 0x26b   : > { %v1256_v15 = vpop.permute.xlu1 %1255 }
 0x26c   : > { %v1444_v12 = vpop.permute.xlu0 %1443  ;;  %1337 = vst.msk [vmem:[#allocation3 + $0x78] sm:$0xff] %vm1321_vm7, %v1256_v15 }
 0x26d   : > { %1528 = vst.msk [vmem:[#allocation3 + $0x60] sm:$0xff] %vm1515_vm8, %v1444_v12 }
 0x26f   : > { %v1288_v50 = vpop.permute.xlu1 %1287 }
 0x270   : > { %v1476_v14 = vpop.permute.xlu0 %1475  ;;  %1353 = vst.msk [vmem:[#allocation3 + $0xf8] sm:$0xff] %vm1321_vm7, %v1288_v50 }
 0x271   : > { %1544 = vst.msk [vmem:[#allocation3 + $0xe0] sm:$0xff] %vm1515_vm8, %v1476_v14 }
 0x273   : > { %v1446_v17 = vpop.permute.xlu1 %1445 }
 0x274   : > { %v1448_v16 = vpop.permute.xlu0 %1447  ;;  %1529 = vst.msk [vmem:[#allocation3 + $0x68] sm:$0xff] %vm1515_vm8, %v1446_v17 }
 0x275   : > { %1530 = vst.msk [vmem:[#allocation3 + $0x70] sm:$0xff] %vm1515_vm8, %v1448_v16 }
 0x277   : > { %v1478_v52 = vpop.permute.xlu1 %1477 }
 0x278   : > { %v1480_v29 = vpop.permute.xlu0 %1479  ;;  %1545 = vst.msk [vmem:[#allocation3 + $0xe8] sm:$0xff] %vm1515_vm8, %v1478_v52 }
 0x279   : > { %1546 = vst.msk [vmem:[#allocation3 + $0xf0] sm:$0xff] %vm1515_vm8, %v1480_v29 }
 0x27b   : > { %v1450_v28 = vpop.permute.xlu1 %1449 }
 0x27c   : > { %v1637_v19 = vpop.permute.xlu0 %1636  ;;  %1531 = vst.msk [vmem:[#allocation3 + $0x78] sm:$0xff] %vm1515_vm8, %v1450_v28 }
 0x27d   : > { %1721 = vst.msk [vmem:[#allocation3 + $0x60] sm:$0xff] %vm1708_vm9, %v1637_v19 }
 0x27f   : > { %v1482_v42 = vpop.permute.xlu1 %1481 }
 0x280   : > { %v1669_v55 = vpop.permute.xlu0 %1668  ;;  %1547 = vst.msk [vmem:[#allocation3 + $0xf8] sm:$0xff] %vm1515_vm8, %v1482_v42 }
 0x281   : > { %1737 = vst.msk [vmem:[#allocation3 + $0xe0] sm:$0xff] %vm1708_vm9, %v1669_v55 }
 0x283   : > { %v1639_v33 = vpop.permute.xlu1 %1638 }
 0x284   : > { %v1641_v36 = vpop.permute.xlu0 %1640  ;;  %1722 = vst.msk [vmem:[#allocation3 + $0x68] sm:$0xff] %vm1708_vm9, %v1639_v33 }
 0x285   : > { %1723 = vst.msk [vmem:[#allocation3 + $0x70] sm:$0xff] %vm1708_vm9, %v1641_v36 }
 0x287   : > { %v1671_v18 = vpop.permute.xlu1 %1670 }
 0x288   : > { %v1673_v46 = vpop.permute.xlu0 %1672  ;;  %1738 = vst.msk [vmem:[#allocation3 + $0xe8] sm:$0xff] %vm1708_vm9, %v1671_v18 }
 0x289   : > { %1739 = vst.msk [vmem:[#allocation3 + $0xf0] sm:$0xff] %vm1708_vm9, %v1673_v46  ;;  %v2450_v47 = vpop.f32.mrb[0].mxu0 }
 0x28a   : > { %v2105_v57 = vadd.f32 %v2450_v47, %v3576_v60  ;;  %v2096_v59 = vpop.f32.mrb[1].mxu0 }
 0x28b   : > { %v2097_v63 = vadd.f32 %v3576_v60, %v2096_v59  ;;  %v1643_v3 = vpop.permute.xlu1 %1642  ;;  %v2451_v49 = vpop.f32.mrb[2].mxu0 }
 0x28c   : > { %2226 = vst.msk [vmem:[%s3583_s11 + $0x10] sm:$0xff] %vm2223_vm12, %v2105_v57  ;;  %v2108_v0 = vadd.f32 %v2451_v49, %v3576_v60  ;;  %v2099_v41 = vpop.f32.mrb[3].mxu0  ;;  %v1830_v1 = vpop.permute.xlu0 %1829 }
 0x28d   : > { %1724 = vst.msk [vmem:[#allocation3 + $0x78] sm:$0xff] %vm1708_vm9, %v1643_v3  ;;  %v2100_v6 = vadd.f32 %v3576_v60, %v2099_v41  ;;  %v2466_v45 = vpop.f32.mrb[0].mxu1 }
 0x28e   : > { %2224 = vst.msk [vmem:[%s3583_s11] sm:$0xff] %vm2223_vm12, %v2097_v63  ;;  %2227 = vst.msk [vmem:[%s3583_s11 + $0x18] sm:$0xff] %vm2223_vm12, %v2108_v0  ;;  %v2169_v26 = vadd.f32 %v2466_v45, %v3576_v60  ;;  %v2160_v44 = vpop.f32.mrb[1].mxu1 }
 0x28f   : > { %1914 = vst.msk [vmem:[#allocation3 + $0x60] sm:$0xff] %vm1901_vm10, %v1830_v1  ;;  %v2161_v7 = vadd.f32 %v3576_v60, %v2160_v44  ;;  %v2467_v8 = vpop.f32.mrb[2].mxu1  ;;  %v1675_v20 = vpop.permute.xlu1 %1674 }
 0x290   : > { %2225 = vst.msk [vmem:[%s3583_s11 + $0x8] sm:$0xff] %vm2223_vm12, %v2100_v6  ;;  %2242 = vst.msk [vmem:[%s3583_s11 + $0x90] sm:$0xff] %vm2223_vm12, %v2169_v26  ;;  %v2172_v27 = vadd.f32 %v2467_v8, %v3576_v60  ;;  %v2163_v30 = vpop.f32.mrb[3].mxu1  ;;  %v1862_v43 = vpop.permute.xlu0 %1861 }
 0x291   : > { %1740 = vst.msk [vmem:[#allocation3 + $0xf8] sm:$0xff] %vm1708_vm9, %v1675_v20  ;;  %v2164_v9 = vadd.f32 %v3576_v60, %v2163_v30 }
 0x292   : > { %2240 = vst.msk [vmem:[%s3583_s11 + $0x80] sm:$0xff] %vm2223_vm12, %v2161_v7  ;;  %2243 = vst.msk [vmem:[%s3583_s11 + $0x98] sm:$0xff] %vm2223_vm12, %v2172_v27 }
 0x293   : > { %1930 = vst.msk [vmem:[#allocation3 + $0xe0] sm:$0xff] %vm1901_vm10, %v1862_v43  ;;  %v1832_v2 = vpop.permute.xlu1 %1831 }
 0x294   : > { %2241 = vst.msk [vmem:[%s3583_s11 + $0x88] sm:$0xff] %vm2223_vm12, %v2164_v9  ;;  %v1834_v34 = vpop.permute.xlu0 %1833 }
 0x295   : > { %1915 = vst.msk [vmem:[#allocation3 + $0x68] sm:$0xff] %vm1901_vm10, %v1832_v2  ;;  %1916 = vst.msk [vmem:[#allocation3 + $0x70] sm:$0xff] %vm1901_vm10, %v1834_v34 }
 0x296   : > { %v1946_v31 = vld [vmem:[#allocation3 + $0x60] sm:$0xff] }
 0x297   : > { %v1864_v4 = vpop.permute.xlu1 %1863 }
 0x298   : > { %1931 = vst.msk [vmem:[#allocation3 + $0xe8] sm:$0xff] %vm1901_vm10, %v1864_v4  ;;  %v1866_v21 = vpop.permute.xlu0 %1865 }
 0x299   : > { %1932 = vst.msk [vmem:[#allocation3 + $0xf0] sm:$0xff] %vm1901_vm10, %v1866_v21 }
 0x29a   : > { %v1962_v23 = vld [vmem:[#allocation3 + $0xe0] sm:$0xff] }
 0x29b   : > { %v1836_v22 = vpop.permute.xlu1 %1835 }
 0x29c   : > { %v1947_v51 = vld [vmem:[#allocation3 + $0x68] sm:$0xff]  ;;  %1917 = vst.msk [vmem:[#allocation3 + $0x78] sm:$0xff] %vm1901_vm10, %v1836_v22  ;;  %v1948_v38 = vld [vmem:[#allocation3 + $0x70] sm:$0xff] }
 0x29d   : > { %v1972_v5 = vpack.c.bf16 %v1947_v51, %v1946_v31 }
 0x29f   : > { %2460 = vmatprep.mubr.msk.bf16.mxu0 %vm2009_vm11, %v1972_v5  ;;  %v1868_v25 = vpop.permute.xlu1 %1867  ;;  %v1963_v53 = vld [vmem:[#allocation3 + $0xe8] sm:$0xff] }
 0x2a0   : > { %1933 = vst.msk [vmem:[#allocation3 + $0xf8] sm:$0xff] %vm1901_vm10, %v1868_v25  ;;  %v1980_v35 = vpack.c.bf16 %v1963_v53, %v1962_v23  ;;  %v1964_v40 = vld [vmem:[#allocation3 + $0xf0] sm:$0xff] }
 0x2a2   : > { %2476 = vmatprep.mubr.msk.bf16.mxu1 %vm2009_vm11, %v1980_v35 }
 0x2a3   : > { %v1949_v54 = vld [vmem:[#allocation3 + $0x78] sm:$0xff] }
 0x2a4   : > { %v1973_v32 = vpack.c.bf16 %v1949_v54, %v1948_v38 }
 0x2a6   : > { %2461 = vmatmul.mubr.msk.bf16.gmra.mrb[12].mxu0 %vm2009_vm11, %v1973_v32 }
 0x2a7   : > { %v1965_v56 = vld [vmem:[#allocation3 + $0xf8] sm:$0xff] }
 0x2a8   : > { %v1981_v58 = vpack.c.bf16 %v1965_v56, %v1964_v40 }
 0x2aa   : > { %2477 = vmatmul.mubr.msk.bf16.gmra.mrb[12].mxu1 %vm2009_vm11, %v1981_v58 }
 0x2d9   : > { %v2454_v24 = vpop.f32.mrb[4].mxu0 }
 0x2da   : > { %v2121_v39 = vadd.f32 %v2454_v24, %v3576_v60  ;;  %v2112_v48 = vpop.f32.mrb[5].mxu0 }
 0x2db   : > { %v2113_v10 = vadd.f32 %v3576_v60, %v2112_v48  ;;  %v2455_v62 = vpop.f32.mrb[6].mxu0 }
 0x2dc   : > { %2230 = vst.msk [vmem:[%s3583_s11 + $0x30] sm:$0xff] %vm2223_vm12, %v2121_v39  ;;  %v2124_v61 = vadd.f32 %v2455_v62, %v3576_v60  ;;  %v2115_v13 = vpop.f32.mrb[7].mxu0 }
 0x2dd   : > { %2228 = vst.msk [vmem:[%s3583_s11 + $0x20] sm:$0xff] %vm2223_vm12, %v2113_v10  ;;  %v2116_v37 = vadd.f32 %v3576_v60, %v2115_v13  ;;  %v2470_v11 = vpop.f32.mrb[4].mxu1 }
 0x2de   : > { %2231 = vst.msk [vmem:[%s3583_s11 + $0x38] sm:$0xff] %vm2223_vm12, %v2124_v61  ;;  %v2185_v15 = vadd.f32 %v2470_v11, %v3576_v60  ;;  %v2176_v12 = vpop.f32.mrb[5].mxu1 }
 0x2df   : > { %2229 = vst.msk [vmem:[%s3583_s11 + $0x28] sm:$0xff] %vm2223_vm12, %v2116_v37  ;;  %v2177_v50 = vadd.f32 %v3576_v60, %v2176_v12  ;;  %v2471_v14 = vpop.f32.mrb[6].mxu1 }
 0x2e0   : > { %2246 = vst.msk [vmem:[%s3583_s11 + $0xb0] sm:$0xff] %vm2223_vm12, %v2185_v15  ;;  %v2188_v17 = vadd.f32 %v2471_v14, %v3576_v60  ;;  %v2179_v16 = vpop.f32.mrb[7].mxu1 }
 0x2e1   : > { %2244 = vst.msk [vmem:[%s3583_s11 + $0xa0] sm:$0xff] %vm2223_vm12, %v2177_v50  ;;  %v2180_v52 = vadd.f32 %v3576_v60, %v2179_v16 }
 0x2e2   : > { %2247 = vst.msk [vmem:[%s3583_s11 + $0xb8] sm:$0xff] %vm2223_vm12, %v2188_v17 }
 0x2e3   : > { %2245 = vst.msk [vmem:[%s3583_s11 + $0xa8] sm:$0xff] %vm2223_vm12, %v2180_v52 }
 0x329   : > { %v2458_v29 = vpop.f32.mrb[8].mxu0 }
 0x32a   : > { %v2137_v28 = vadd.f32 %v2458_v29, %v3576_v60  ;;  %v2128_v19 = vpop.f32.mrb[9].mxu0 }
 0x32b   : > { %v2129_v42 = vadd.f32 %v3576_v60, %v2128_v19  ;;  %v2459_v55 = vpop.f32.mrb[10].mxu0 }
 0x32c   : > { %2234 = vst.msk [vmem:[%s3583_s11 + $0x50] sm:$0xff] %vm2223_vm12, %v2137_v28  ;;  %v2140_v33 = vadd.f32 %v2459_v55, %v3576_v60  ;;  %v2131_v36 = vpop.f32.mrb[11].mxu0 }
 0x32d   : > { %2232 = vst.msk [vmem:[%s3583_s11 + $0x40] sm:$0xff] %vm2223_vm12, %v2129_v42  ;;  %v2132_v18 = vadd.f32 %v3576_v60, %v2131_v36  ;;  %v2474_v46 = vpop.f32.mrb[8].mxu1 }
 0x32e   : > { %2235 = vst.msk [vmem:[%s3583_s11 + $0x58] sm:$0xff] %vm2223_vm12, %v2140_v33  ;;  %v2201_v47 = vadd.f32 %v2474_v46, %v3576_v60  ;;  %v2192_v57 = vpop.f32.mrb[9].mxu1 }
 0x32f   : > { %2233 = vst.msk [vmem:[%s3583_s11 + $0x48] sm:$0xff] %vm2223_vm12, %v2132_v18  ;;  %v2193_v59 = vadd.f32 %v3576_v60, %v2192_v57  ;;  %v2475_v63 = vpop.f32.mrb[10].mxu1 }
 0x330   : > { %2250 = vst.msk [vmem:[%s3583_s11 + $0xd0] sm:$0xff] %vm2223_vm12, %v2201_v47  ;;  %v2204_v3 = vadd.f32 %v2475_v63, %v3576_v60  ;;  %v2195_v49 = vpop.f32.mrb[11].mxu1 }
 0x331   : > { %2248 = vst.msk [vmem:[%s3583_s11 + $0xc0] sm:$0xff] %vm2223_vm12, %v2193_v59  ;;  %v2196_v0 = vadd.f32 %v3576_v60, %v2195_v49 }
 0x332   : > { %2251 = vst.msk [vmem:[%s3583_s11 + $0xd8] sm:$0xff] %vm2223_vm12, %v2204_v3 }
 0x333   : > { %2249 = vst.msk [vmem:[%s3583_s11 + $0xc8] sm:$0xff] %vm2223_vm12, %v2196_v0 }
 0x379   : > { %v2462_v41 = vpop.f32.mrb[12].mxu0 }
 0x37a   : > { %v2153_v1 = vadd.f32 %v2462_v41, %v3576_v60  ;;  %v2144_v6 = vpop.f32.mrb[13].mxu0 }
 0x37b   : > { %v2145_v45 = vadd.f32 %v3576_v60, %v2144_v6  ;;  %v2463_v26 = vpop.f32.mrb[14].mxu0 }
 0x37c   : > { %2238 = vst.msk [vmem:[%s3583_s11 + $0x70] sm:$0xff] %vm2223_vm12, %v2153_v1  ;;  %v2156_v44 = vadd.f32 %v2463_v26, %v3576_v60  ;;  %v2147_v7 = vpop.f32.mrb[15].mxu0 }
 0x37d   : > { %2236 = vst.msk [vmem:[%s3583_s11 + $0x60] sm:$0xff] %vm2223_vm12, %v2145_v45  ;;  %v2148_v8 = vadd.f32 %v3576_v60, %v2147_v7  ;;  %v2478_v20 = vpop.f32.mrb[12].mxu1 }
 0x37e   : > { %2239 = vst.msk [vmem:[%s3583_s11 + $0x78] sm:$0xff] %vm2223_vm12, %v2156_v44  ;;  %v2217_v27 = vadd.f32 %v2478_v20, %v3576_v60  ;;  %v2208_v30 = vpop.f32.mrb[13].mxu1 }
 0x37f   : > { %2237 = vst.msk [vmem:[%s3583_s11 + $0x68] sm:$0xff] %vm2223_vm12, %v2148_v8  ;;  %v2209_v43 = vadd.f32 %v3576_v60, %v2208_v30  ;;  %v2479_v9 = vpop.f32.mrb[14].mxu1 }
 0x380   : > { %2254 = vst.msk [vmem:[%s3583_s11 + $0xf0] sm:$0xff] %vm2223_vm12, %v2217_v27  ;;  %v2220_v2 = vadd.f32 %v2479_v9, %v3576_v60  ;;  %v2211_v34 = vpop.f32.mrb[15].mxu1 }
 0x381   : > { %2252 = vst.msk [vmem:[%s3583_s11 + $0xe0] sm:$0xff] %vm2223_vm12, %v2209_v43  ;;  %v2212_v4 = vadd.f32 %v3576_v60, %v2211_v34 }
 0x382   : > { %2255 = vst.msk [vmem:[%s3583_s11 + $0xf8] sm:$0xff] %vm2223_vm12, %v2220_v2 }
 0x383   : > { %2253 = vst.msk [vmem:[%s3583_s11 + $0xe8] sm:$0xff] %vm2223_vm12, %v2212_v4 }
 0x384 PF: > { %s13_s12 = sadd.s32 1, %s2514_s12  }
 0x385   : > { %p10_p4 = scmp.ge.s32.totalorder %s13_s12, 4  }
 0x387   :  { %12 = sbr.rel (!%p10_p4) target bundleno = 1 (0x1), region = 64 }

</bundles_post_ra>
